<compile_context>
chip_gen: v7x
topology: tpu7x:2x2x1
jax: 0.10.0
libtpu: 0.0.40
codegen_flags: <defaults>
</compile_context>

<pallas_src>
import functools
import math

import jax
import jax.numpy as jnp
from jax.experimental import pallas as pl
from jax.experimental.pallas import tpu as pltpu


def _encoder_kernel(scale, eps, seq_n,
                    x_ref, par_ref, wqkv_ref, wo_ref, w1_ref, w2_ref, o_ref):
    # x_ref    : [rows, D]   f32   (rows = block_b * N, flattened batch*sequence)
    # par_ref  : [8, P]      f32   packed rows: gamma, beta, bo, b1, b2 (P = max(D, H))
    # wqkv_ref : [D, 3*inner] bf16
    # wo_ref   : [inner, D]   bf16
    # w1_ref   : [D, H]       bf16
    # w2_ref   : [H, D]       bf16
    rows, d = x_ref.shape
    inner = wo_ref.shape[0]
    h_dim = w1_ref.shape[1]
    bblk = rows // seq_n

    gamma = par_ref[0:1, :d]
    beta = par_ref[1:2, :d]
    bo = par_ref[2:3, :d]
    b1 = par_ref[3:4, :h_dim]
    b2 = par_ref[4:5, :d]

    x = x_ref[...]                                       # [rows, D] f32

    def layer_norm(t):
        mean = jnp.mean(t, axis=-1, keepdims=True)
        cent = t - mean
        var = jnp.mean(cent * cent, axis=-1, keepdims=True)
        return cent * jax.lax.rsqrt(var + eps) * gamma + beta

    # ---- LayerNorm #1 + fused QKV projection (one wide MXU matmul) ----
    xn = layer_norm(x)
    # Cast the result once to bf16 so only the half-width tensor stays live.
    qkv = jnp.dot(xn.astype(jnp.bfloat16), wqkv_ref[...],
                  preferred_element_type=jnp.float32).astype(jnp.bfloat16)  # [rows, 3*inner]
    q = qkv[:, :inner].reshape(bblk, seq_n, inner)
    k = qkv[:, inner:2 * inner].reshape(bblk, seq_n, inner)
    v = qkv[:, 2 * inner:].reshape(bblk, seq_n, inner)

    # ---- attention scores: batched dot_general, contraction on last dims (no k.T) ----
    scores = jnp.einsum("bnd,bmd->bnm", q, k,
                        preferred_element_type=jnp.float32) * scale        # [bblk, N, N]

    # Global softmax over the whole N*N matrix per batch element (as in the module),
    # with the normalization deferred past the AV matmul.
    m = jnp.max(jnp.max(scores, axis=2, keepdims=True), axis=1, keepdims=True)
    e = jnp.exp(scores - m)
    denom = jnp.sum(jnp.sum(e, axis=2, keepdims=True), axis=1, keepdims=True)

    sa = jnp.einsum("bnm,bmd->bnd", e.astype(jnp.bfloat16), v,
                    preferred_element_type=jnp.float32)                    # [bblk, N, inner]
    sa = sa * pl.reciprocal(denom, approx=True)                            # EUP, off VALU

    # ---- output projection + residual #1 ----
    msa = jnp.dot(sa.reshape(rows, inner).astype(jnp.bfloat16), wo_ref[...],
                  preferred_element_type=jnp.float32) + bo                 # [rows, D]
    s1 = msa + x

    # ---- LayerNorm #2 (same gamma/beta) + MLP + residual #2 ----
    s1n = layer_norm(s1)
    h = jnp.dot(s1n.astype(jnp.bfloat16), w1_ref[...],
                preferred_element_type=jnp.float32) + b1                   # [rows, H]
    h = jnp.maximum(h, 0.0)
    mlp = jnp.dot(h.astype(jnp.bfloat16), w2_ref[...],
                  preferred_element_type=jnp.float32) + b2                 # [rows, D]
    # TODO(synk): for rows >> 256 at real model sizes, split this body with an inner
    # lax.fori_loop over row sub-blocks to bound live f32 intermediates / spills.
    o_ref[...] = (mlp + s1).astype(o_ref.dtype)


def _vmem_bytes_estimate(rows, N, D, H, inner):
    """Rough per-grid-step VMEM footprint (bytes) used to bound block_b and set
    vmem_limit_bytes (v7x has only 64 MiB physical VMEM)."""
    bblk = max(rows // N, 1)
    weights = 2 * (3 * D * inner + inner * D + D * H + H * D)    # bf16, single-buffered
    params = 8 * max(D, H) * 4
    io = 2 * (rows * D * 4) * 2                                  # x + out blocks, double-buffered f32
    interm = (rows * 3 * inner * 2                               # qkv (bf16)
              + rows * inner * 4                                 # sa (f32)
              + bblk * N * N * 4 * 2                             # scores + e (f32)
              + rows * (4 * D + H) * 4)                          # x, xn, s1, s1n, h (f32)
    return weights + params + io + 2 * interm                    # 2x fudge for spills/relayouts


def _choose_block_b(B, N, D, H, inner, *, rows_target=256, min_steps=4,
                    vmem_budget=40 << 20):
    """Pick batch elements per grid step: fill the MXU M dim (rows >= rows_target when
    the batch allows), keep >= min_steps grid steps (2 per v7x TensorCore), and stay
    inside the VMEM budget."""
    divisors = [d for d in range(1, B + 1) if B % d == 0]

    def ok(d):
        rows = d * N
        aligned = (rows % 8 == 0) or (B // d == 1)   # (8,128) block-shape constraint
        return aligned and _vmem_bytes_estimate(rows, N, D, H, inner) <= vmem_budget

    for steps_floor in (min_steps, 2, 1):
        cand = [d for d in divisors if B // d >= steps_floor and ok(d)]
        if not cand:
            continue
        hit = [d for d in cand if d * N >= rows_target]
        # Smallest block that fills the MXU (keeps the most grid steps), else the
        # biggest block that still respects the step floor.
        return min(hit) if hit else max(cand)
    return B   # single full-array step as a last resort (always a legal block)


def transformer_encoder_forward(x, params, *, dim_head=64, eps=1e-5, block_b=None):
    """x: [B, N, D]. params: dict with gamma, beta, wq, wk, wv, wo, bo, w1, b1, w2, b2.
    Weights are stored as [in_features, out_features]."""
    B, N, D = x.shape
    inner = params["wq"].shape[1]
    H = params["w1"].shape[1]
    f32, bf16 = jnp.float32, jnp.bfloat16

    # Fused QKV weight: one DMA and one wide MXU pass instead of three narrow ones.
    # NOTE(v6e/v7x): at real model sizes keep D (the contraction dim) a multiple of 256
    # to fill the 256-wide MXU; at D=32 this is already optimal for v5e's 128x128 MXU.
    wqkv = jnp.concatenate([params["wq"], params["wk"], params["wv"]], axis=1).astype(bf16)
    wo = params["wo"].astype(bf16)
    w1 = params["w1"].astype(bf16)
    w2 = params["w2"].astype(bf16)

    # Pack the five tiny per-feature parameter rows into ONE [8, P] f32 slab
    # (one DMA / BlockSpec instead of five sublane-padded ones).
    P = max(D, H)

    def _row(v):
        v = v.reshape(1, -1).astype(f32)
        return jnp.pad(v, ((0, 0), (0, P - v.shape[1])))

    packed = jnp.concatenate(
        [_row(params["gamma"]), _row(params["beta"]), _row(params["bo"]),
         _row(params["b1"]), _row(params["b2"]), jnp.zeros((3, P), f32)], axis=0)  # [8, P]

    if block_b is None:
        block_b = _choose_block_b(B, N, D, H, inner)
    assert B % block_b == 0
    grid_b = B // block_b
    rows_blk = block_b * N
    assert rows_blk % 8 == 0 or grid_b == 1

    est = _vmem_bytes_estimate(rows_blk, N, D, H, inner)
    vmem_limit = int(min(max(2 * est, 32 << 20), 56 << 20))   # stay inside v7x's 64 MiB

    # Flattened [B*N, D]: free metadata reshape, gives the kernel a big M dimension
    # per step, and the input/output move at their true (unpadded) width.
    x2 = x.reshape(B * N, D).astype(f32)

    scale = float(dim_head) ** (-0.5)
    kernel = functools.partial(_encoder_kernel, scale, eps, N)

    def _call(single_buffer_weights):
        # Constant-index (weight) blocks are identical every step -> single-buffer them.
        wmode = {"pipeline_mode": pl.Buffered(1)} if single_buffer_weights else {}
        return pl.pallas_call(
            kernel,
            out_shape=jax.ShapeDtypeStruct((B * N, D), f32),
            grid_spec=pltpu.PrefetchScalarGridSpec(
                num_scalar_prefetch=0,
                grid=(grid_b,),
                in_specs=[
                    pl.BlockSpec((rows_blk, D), lambda b: (b, 0)),             # x rows
                    pl.BlockSpec((8, P), lambda b: (0, 0), **wmode),           # packed params
                    pl.BlockSpec((D, 3 * inner), lambda b: (0, 0), **wmode),   # wqkv
                    pl.BlockSpec((inner, D), lambda b: (0, 0), **wmode),       # wo
                    pl.BlockSpec((D, H), lambda b: (0, 0), **wmode),           # w1
                    pl.BlockSpec((H, D), lambda b: (0, 0), **wmode),           # w2
                ],
                out_specs=pl.BlockSpec((rows_blk, D), lambda b: (b, 0)),
            ),
            compiler_params=pltpu.CompilerParams(
                dimension_semantics=("parallel",),
                vmem_limit_bytes=vmem_limit,
            ),
        )(x2, packed, wqkv, wo, w1, w2)

    try:
        out = _call(True)
    except Exception:
        # pl.Buffered(1) not supported by this JAX build -> default double buffering.
        out = _call(False)

    return out.reshape(B, N, D)


def transformer_encoder_reference(x, p, *, dim_head=64, eps=1e-5):
    """Pure-JAX f32 reference mirroring the PyTorch TransformerEncoder.forward."""
    B, N, _ = x.shape
    scale = dim_head ** (-0.5)

    def ln(t):
        mean = jnp.mean(t, axis=-1, keepdims=True)
        var = jnp.mean((t - mean) ** 2, axis=-1, keepdims=True)
        return (t - mean) / jnp.sqrt(var + eps) * p["gamma"] + p["beta"]

    xn = ln(x)
    q = xn @ p["wq"]
    k = xn @ p["wk"]
    v = xn @ p["wv"]
    A = jnp.einsum("bnd,bmd->bnm", q, k) * scale
    A = jax.nn.softmax(A.reshape(B, -1), axis=-1).reshape(B, N, N)   # global softmax
    sa = jnp.einsum("bnm,bmd->bnd", A, v)
    msa = sa @ p["wo"] + p["bo"]
    s1 = msa + x
    s1n = ln(s1)
    h = jax.nn.relu(s1n @ p["w1"] + p["b1"])
    mlp = h @ p["w2"] + p["b2"]
    return mlp + s1


if __name__ == "__main__":
    # Small shapes consistent with the module defaults:
    # TransformerEncoder(dim=32, hidden_dim=64) -> MSA(dim=32, heads=8, dim_head=64).
    B, N, D = 16, 8, 32
    heads, dim_head = 8, 64
    inner = heads * dim_head      # 512
    hidden = 64

    key = jax.random.PRNGKey(0)
    keys = jax.random.split(key, 10)

    def init_u(k, fan_in, shape):
        bound = 1.0 / math.sqrt(fan_in)
        return jax.random.uniform(k, shape, jnp.float32, -bound, bound)

    x = jax.random.normal(keys[0], (B, N, D), dtype=jnp.float32)

    params = dict(
        gamma=jnp.ones((D,), jnp.float32),     # nn.LayerNorm default init
        beta=jnp.zeros((D,), jnp.float32),
        wq=init_u(keys[1], D, (D, inner)),
        wk=init_u(keys[2], D, (D, inner)),
        wv=init_u(keys[3], D, (D, inner)),
        wo=init_u(keys[4], inner, (inner, D)),
        bo=init_u(keys[5], inner, (D,)),
        w1=init_u(keys[6], D, (D, hidden)),
        b1=init_u(keys[7], D, (hidden,)),
        w2=init_u(keys[8], hidden, (hidden, D)),
        b2=init_u(keys[9], hidden, (D,)),
    )

    out = transformer_encoder_forward(x, params, dim_head=dim_head)
    out = jax.block_until_ready(out)

    ref = transformer_encoder_reference(x, params, dim_head=dim_head)

    assert out.shape == (B, N, D)
    # Intentional tolerance: bf16 MXU operands + pl.reciprocal(approx=True) on the
    # softmax denominator give ~1e-2-level deviation from the f32 reference.
    max_err = float(jnp.max(jnp.abs(out - ref)))
    assert jnp.allclose(out, ref, atol=5e-2, rtol=5e-2), f"max abs err {max_err}"

    print("KERNEL_OK")
</pallas_src>

<mosaic_0001>
module attributes {stable_mosaic.version = 11 : i64} {
  func.func @_encoder_kernel(%arg0: i32, %arg1: memref<32x32xf32, #tpu.memory_space<vmem>>, %arg2: memref<8x64xf32, #tpu.memory_space<vmem>>, %arg3: memref<32x1536xbf16, #tpu.memory_space<vmem>>, %arg4: memref<512x32xbf16, #tpu.memory_space<vmem>>, %arg5: memref<32x64xbf16, #tpu.memory_space<vmem>>, %arg6: memref<64x32xbf16, #tpu.memory_space<vmem>>, %arg7: memref<32x32xf32, #tpu.memory_space<vmem>>) attributes {dimension_semantics = [#tpu.dimension_semantics<parallel>], iteration_bounds = array<i64: 4>, scalar_prefetch = 0 : i64, scratch_operands = 0 : i64, tpu.core_type = #tpu.core_type<tc>, window_params = [{transform_indices = @transform_0, window_bounds = array<i64: 32, 32>}, {pipeline_mode = #tpu.pipeline_mode<synchronous>, transform_indices = @transform_1, window_bounds = array<i64: 8, 64>}, {pipeline_mode = #tpu.pipeline_mode<synchronous>, transform_indices = @transform_2, window_bounds = array<i64: 32, 1536>}, {pipeline_mode = #tpu.pipeline_mode<synchronous>, transform_indices = @transform_3, window_bounds = array<i64: 512, 32>}, {pipeline_mode = #tpu.pipeline_mode<synchronous>, transform_indices = @transform_4, window_bounds = array<i64: 32, 64>}, {pipeline_mode = #tpu.pipeline_mode<synchronous>, transform_indices = @transform_5, window_bounds = array<i64: 64, 32>}, {transform_indices = @transform_6, window_bounds = array<i64: 32, 32>}]} {
    %c0 = arith.constant 0 : index
    %c0_0 = arith.constant 0 : index
    %0 = vector.load %arg2[%c0, %c0_0] : memref<8x64xf32, #tpu.memory_space<vmem>>, vector<1x32xf32>
    %c1 = arith.constant 1 : index
    %c0_1 = arith.constant 0 : index
    %1 = vector.load %arg2[%c1, %c0_1] : memref<8x64xf32, #tpu.memory_space<vmem>>, vector<1x32xf32>
    %c2 = arith.constant 2 : index
    %c0_2 = arith.constant 0 : index
    %2 = vector.load %arg2[%c2, %c0_2] : memref<8x64xf32, #tpu.memory_space<vmem>>, vector<1x32xf32>
    %c3 = arith.constant 3 : index
    %c0_3 = arith.constant 0 : index
    %3 = vector.load %arg2[%c3, %c0_3] : memref<8x64xf32, #tpu.memory_space<vmem>>, vector<1x64xf32>
    %c4 = arith.constant 4 : index
    %c0_4 = arith.constant 0 : index
    %4 = vector.load %arg2[%c4, %c0_4] : memref<8x64xf32, #tpu.memory_space<vmem>>, vector<1x32xf32>
    %c0_5 = arith.constant 0 : index
    %c0_6 = arith.constant 0 : index
    %5 = vector.load %arg1[%c0_5, %c0_6] : memref<32x32xf32, #tpu.memory_space<vmem>>, vector<32x32xf32>
    %cst = arith.constant dense<0.000000e+00> : vector<32xf32>
    %6 = vector.multi_reduction <add>, %5, %cst [1] : vector<32x32xf32> to vector<32xf32>
    %7 = vector.shape_cast %6 : vector<32xf32> to vector<32x1xf32>
    %cst_7 = arith.constant 3.200000e+01 : f32
    %8 = vector.broadcast %cst_7 : f32 to vector<32x1xf32>
    %9 = arith.divf %7, %8 : vector<32x1xf32>
    %10 = vector.broadcast %9 : vector<32x1xf32> to vector<32x32xf32>
    %11 = arith.subf %5, %10 : vector<32x32xf32>
    %12 = arith.mulf %11, %11 : vector<32x32xf32>
    %cst_8 = arith.constant dense<0.000000e+00> : vector<32xf32>
    %13 = vector.multi_reduction <add>, %12, %cst_8 [1] : vector<32x32xf32> to vector<32xf32>
    %14 = vector.shape_cast %13 : vector<32xf32> to vector<32x1xf32>
    %cst_9 = arith.constant 3.200000e+01 : f32
    %15 = vector.broadcast %cst_9 : f32 to vector<32x1xf32>
    %16 = arith.divf %14, %15 : vector<32x1xf32>
    %cst_10 = arith.constant 9.99999974E-6 : f32
    %17 = vector.broadcast %cst_10 : f32 to vector<32x1xf32>
    %18 = arith.addf %16, %17 : vector<32x1xf32>
    %19 = math.rsqrt %18 : vector<32x1xf32>
    %20 = vector.broadcast %19 : vector<32x1xf32> to vector<32x32xf32>
    %21 = arith.mulf %11, %20 : vector<32x32xf32>
    %22 = vector.broadcast %0 : vector<1x32xf32> to vector<32x32xf32>
    %23 = arith.mulf %21, %22 : vector<32x32xf32>
    %24 = vector.broadcast %1 : vector<1x32xf32> to vector<32x32xf32>
    %25 = arith.addf %23, %24 : vector<32x32xf32>
    %26 = arith.truncf %25 : vector<32x32xf32> to vector<32x32xbf16>
    %c0_11 = arith.constant 0 : index
    %c0_12 = arith.constant 0 : index
    %27 = vector.load %arg3[%c0_11, %c0_12] : memref<32x1536xbf16, #tpu.memory_space<vmem>>, vector<32x1536xbf16>
    %cst_13 = arith.constant dense<0.000000e+00> : vector<32x1536xf32>
    %28 = tpu.matmul %26, %27, %cst_13 {dimension_numbers = #tpu.dot_dimension_numbers<[1], [0], [0], [1], [0, 0, 1, 1], [], []>} : vector<32x32xbf16>, vector<32x1536xbf16>, vector<32x1536xf32> -> vector<32x1536xf32>
    %29 = arith.truncf %28 : vector<32x1536xf32> to vector<32x1536xbf16>
    %30 = vector.extract_strided_slice %29 {offsets = [0, 0], sizes = [32, 512], strides = [1, 1]} : vector<32x1536xbf16> to vector<32x512xbf16>
    %31 = vector.shape_cast %30 : vector<32x512xbf16> to vector<4x8x512xbf16>
    %32 = vector.extract_strided_slice %29 {offsets = [0, 512], sizes = [32, 512], strides = [1, 1]} : vector<32x1536xbf16> to vector<32x512xbf16>
    %33 = vector.shape_cast %32 : vector<32x512xbf16> to vector<4x8x512xbf16>
    %34 = vector.extract_strided_slice %29 {offsets = [0, 1024], sizes = [32, 512], strides = [1, 1]} : vector<32x1536xbf16> to vector<32x512xbf16>
    %35 = vector.shape_cast %34 : vector<32x512xbf16> to vector<4x8x512xbf16>
    "tpu.trace_start"() <{level = 10 : i32, message = "bnd,bmd->bnm"}> : () -> ()
    %cst_14 = arith.constant dense<0.000000e+00> : vector<4x8x8xf32>
    %36 = tpu.matmul %31, %33, %cst_14 {dimension_numbers = #tpu.dot_dimension_numbers<[2], [2], [1], [1], [0, 0, 0, 1, 1, 1], [0], [0]>} : vector<4x8x512xbf16>, vector<4x8x512xbf16>, vector<4x8x8xf32> -> vector<4x8x8xf32>
    "tpu.trace_stop"() : () -> ()
    %cst_15 = arith.constant 1.250000e-01 : f32
    %37 = vector.broadcast %cst_15 : f32 to vector<4x8x8xf32>
    %38 = arith.mulf %36, %37 : vector<4x8x8xf32>
    %cst_16 = arith.constant dense<0xFF800000> : vector<4x8xf32>
    %39 = vector.multi_reduction <maximumf>, %38, %cst_16 [2] : vector<4x8x8xf32> to vector<4x8xf32>
    %40 = vector.shape_cast %39 : vector<4x8xf32> to vector<4x8x1xf32>
    %cst_17 = arith.constant dense<0xFF800000> : vector<4x1xf32>
    %41 = vector.multi_reduction <maximumf>, %40, %cst_17 [1] : vector<4x8x1xf32> to vector<4x1xf32>
    %42 = vector.shape_cast %41 : vector<4x1xf32> to vector<4x1x1xf32>
    %43 = vector.broadcast %42 : vector<4x1x1xf32> to vector<4x8x8xf32>
    %44 = arith.subf %38, %43 : vector<4x8x8xf32>
    %45 = math.exp %44 : vector<4x8x8xf32>
    %cst_18 = arith.constant dense<0.000000e+00> : vector<4x8xf32>
    %46 = vector.multi_reduction <add>, %45, %cst_18 [2] : vector<4x8x8xf32> to vector<4x8xf32>
    %47 = vector.shape_cast %46 : vector<4x8xf32> to vector<4x8x1xf32>
    %cst_19 = arith.constant dense<0.000000e+00> : vector<4x1xf32>
    %48 = vector.multi_reduction <add>, %47, %cst_19 [1] : vector<4x8x1xf32> to vector<4x1xf32>
    %49 = vector.shape_cast %48 : vector<4x1xf32> to vector<4x1x1xf32>
    %50 = arith.truncf %45 : vector<4x8x8xf32> to vector<4x8x8xbf16>
    "tpu.trace_start"() <{level = 10 : i32, message = "bnm,bmd->bnd"}> : () -> ()
    %cst_20 = arith.constant dense<0.000000e+00> : vector<4x8x512xf32>
    %51 = tpu.matmul %50, %35, %cst_20 {dimension_numbers = #tpu.dot_dimension_numbers<[2], [1], [1], [2], [0, 0, 0, 1, 1, 2], [0], [0]>} : vector<4x8x8xbf16>, vector<4x8x512xbf16>, vector<4x8x512xf32> -> vector<4x8x512xf32>
    "tpu.trace_stop"() : () -> ()
    %52 = tpu.reciprocal %49 {approx = true} : vector<4x1x1xf32> -> vector<4x1x1xf32>
    %53 = vector.broadcast %52 : vector<4x1x1xf32> to vector<4x8x512xf32>
    %54 = arith.mulf %51, %53 : vector<4x8x512xf32>
    %55 = vector.shape_cast %54 : vector<4x8x512xf32> to vector<32x512xf32>
    %56 = arith.truncf %55 : vector<32x512xf32> to vector<32x512xbf16>
    %c0_21 = arith.constant 0 : index
    %c0_22 = arith.constant 0 : index
    %57 = vector.load %arg4[%c0_21, %c0_22] : memref<512x32xbf16, #tpu.memory_space<vmem>>, vector<512x32xbf16>
    %cst_23 = arith.constant dense<0.000000e+00> : vector<32x32xf32>
    %58 = tpu.matmul %56, %57, %cst_23 {dimension_numbers = #tpu.dot_dimension_numbers<[1], [0], [0], [1], [0, 0, 1, 1], [], []>} : vector<32x512xbf16>, vector<512x32xbf16>, vector<32x32xf32> -> vector<32x32xf32>
    %59 = vector.broadcast %2 : vector<1x32xf32> to vector<32x32xf32>
    %60 = arith.addf %58, %59 : vector<32x32xf32>
    %61 = arith.addf %60, %5 : vector<32x32xf32>
    %cst_24 = arith.constant dense<0.000000e+00> : vector<32xf32>
    %62 = vector.multi_reduction <add>, %61, %cst_24 [1] : vector<32x32xf32> to vector<32xf32>
    %63 = vector.shape_cast %62 : vector<32xf32> to vector<32x1xf32>
    %cst_25 = arith.constant 3.200000e+01 : f32
    %64 = vector.broadcast %cst_25 : f32 to vector<32x1xf32>
    %65 = arith.divf %63, %64 : vector<32x1xf32>
    %66 = vector.broadcast %65 : vector<32x1xf32> to vector<32x32xf32>
    %67 = arith.subf %61, %66 : vector<32x32xf32>
    %68 = arith.mulf %67, %67 : vector<32x32xf32>
    %cst_26 = arith.constant dense<0.000000e+00> : vector<32xf32>
    %69 = vector.multi_reduction <add>, %68, %cst_26 [1] : vector<32x32xf32> to vector<32xf32>
    %70 = vector.shape_cast %69 : vector<32xf32> to vector<32x1xf32>
    %cst_27 = arith.constant 3.200000e+01 : f32
    %71 = vector.broadcast %cst_27 : f32 to vector<32x1xf32>
    %72 = arith.divf %70, %71 : vector<32x1xf32>
    %cst_28 = arith.constant 9.99999974E-6 : f32
    %73 = vector.broadcast %cst_28 : f32 to vector<32x1xf32>
    %74 = arith.addf %72, %73 : vector<32x1xf32>
    %75 = math.rsqrt %74 : vector<32x1xf32>
    %76 = vector.broadcast %75 : vector<32x1xf32> to vector<32x32xf32>
    %77 = arith.mulf %67, %76 : vector<32x32xf32>
    %78 = vector.broadcast %0 : vector<1x32xf32> to vector<32x32xf32>
    %79 = arith.mulf %77, %78 : vector<32x32xf32>
    %80 = vector.broadcast %1 : vector<1x32xf32> to vector<32x32xf32>
    %81 = arith.addf %79, %80 : vector<32x32xf32>
    %82 = arith.truncf %81 : vector<32x32xf32> to vector<32x32xbf16>
    %c0_29 = arith.constant 0 : index
    %c0_30 = arith.constant 0 : index
    %83 = vector.load %arg5[%c0_29, %c0_30] : memref<32x64xbf16, #tpu.memory_space<vmem>>, vector<32x64xbf16>
    %cst_31 = arith.constant dense<0.000000e+00> : vector<32x64xf32>
    %84 = tpu.matmul %82, %83, %cst_31 {dimension_numbers = #tpu.dot_dimension_numbers<[1], [0], [0], [1], [0, 0, 1, 1], [], []>} : vector<32x32xbf16>, vector<32x64xbf16>, vector<32x64xf32> -> vector<32x64xf32>
    %85 = vector.broadcast %3 : vector<1x64xf32> to vector<32x64xf32>
    %86 = arith.addf %84, %85 : vector<32x64xf32>
    %cst_32 = arith.constant 0.000000e+00 : f32
    %87 = vector.broadcast %cst_32 : f32 to vector<32x64xf32>
    %88 = arith.maximumf %86, %87 : vector<32x64xf32>
    %89 = arith.truncf %88 : vector<32x64xf32> to vector<32x64xbf16>
    %c0_33 = arith.constant 0 : index
    %c0_34 = arith.constant 0 : index
    %90 = vector.load %arg6[%c0_33, %c0_34] : memref<64x32xbf16, #tpu.memory_space<vmem>>, vector<64x32xbf16>
    %cst_35 = arith.constant dense<0.000000e+00> : vector<32x32xf32>
    %91 = tpu.matmul %89, %90, %cst_35 {dimension_numbers = #tpu.dot_dimension_numbers<[1], [0], [0], [1], [0, 0, 1, 1], [], []>} : vector<32x64xbf16>, vector<64x32xbf16>, vector<32x32xf32> -> vector<32x32xf32>
    %92 = vector.broadcast %4 : vector<1x32xf32> to vector<32x32xf32>
    %93 = arith.addf %91, %92 : vector<32x32xf32>
    %94 = arith.addf %93, %61 : vector<32x32xf32>
    %c0_36 = arith.constant 0 : index
    %c0_37 = arith.constant 0 : index
    %95 = vector.load %arg7[%c0_36, %c0_37] : memref<32x32xf32, #tpu.memory_space<vmem>>, vector<32x32xf32>
    tpu.vector_store %arg7[%c0_36, %c0_37], %94 {strides = array<i32>} : memref<32x32xf32, #tpu.memory_space<vmem>>, vector<32x32xf32>,
    return
  }
  func.func @transform_0(%arg0: i32) -> (i32, i32) {
    %c0_i32 = arith.constant 0 : i32
    %c0_i32_0 = arith.constant 0 : i32
    return %arg0, %c0_i32 : i32, i32
  }
  func.func @transform_1(%arg0: i32) -> (i32, i32) {
    %c0_i32 = arith.constant 0 : i32
    %c0_i32_0 = arith.constant 0 : i32
    %c0_i32_1 = arith.constant 0 : i32
    return %c0_i32, %c0_i32_0 : i32, i32
  }
  func.func @transform_2(%arg0: i32) -> (i32, i32) {
    %c0_i32 = arith.constant 0 : i32
    %c0_i32_0 = arith.constant 0 : i32
    %c0_i32_1 = arith.constant 0 : i32
    return %c0_i32, %c0_i32_0 : i32, i32
  }
  func.func @transform_3(%arg0: i32) -> (i32, i32) {
    %c0_i32 = arith.constant 0 : i32
    %c0_i32_0 = arith.constant 0 : i32
    %c0_i32_1 = arith.constant 0 : i32
    return %c0_i32, %c0_i32_0 : i32, i32
  }
  func.func @transform_4(%arg0: i32) -> (i32, i32) {
    %c0_i32 = arith.constant 0 : i32
    %c0_i32_0 = arith.constant 0 : i32
    %c0_i32_1 = arith.constant 0 : i32
    return %c0_i32, %c0_i32_0 : i32, i32
  }
  func.func @transform_5(%arg0: i32) -> (i32, i32) {
    %c0_i32 = arith.constant 0 : i32
    %c0_i32_0 = arith.constant 0 : i32
    %c0_i32_1 = arith.constant 0 : i32
    return %c0_i32, %c0_i32_0 : i32, i32
  }
  func.func @transform_6(%arg0: i32) -> (i32, i32) {
    %c0_i32 = arith.constant 0 : i32
    %c0_i32_0 = arith.constant 0 : i32
    return %arg0, %c0_i32 : i32, i32
  }
}

module attributes {stable_mosaic.version = 11 : i64} {
  func.func @_encoder_kernel(%arg0: i32, %arg1: memref<32x32xf32, #tpu.memory_space<vmem>>, %arg2: memref<8x64xf32, #tpu.memory_space<vmem>>, %arg3: memref<32x1536xbf16, #tpu.memory_space<vmem>>, %arg4: memref<512x32xbf16, #tpu.memory_space<vmem>>, %arg5: memref<32x64xbf16, #tpu.memory_space<vmem>>, %arg6: memref<64x32xbf16, #tpu.memory_space<vmem>>, %arg7: memref<32x32xf32, #tpu.memory_space<vmem>>) attributes {dimension_semantics = [#tpu.dimension_semantics<parallel>], iteration_bounds = array<i64: 4>, scalar_prefetch = 0 : i64, scratch_operands = 0 : i64, tpu.core_type = #tpu.core_type<tc>, window_params = [{transform_indices = @transform_0, window_bounds = array<i64: 32, 32>}, {pipeline_mode = #tpu.pipeline_mode<synchronous>, transform_indices = @transform_1, window_bounds = array<i64: 8, 64>}, {pipeline_mode = #tpu.pipeline_mode<synchronous>, transform_indices = @transform_2, window_bounds = array<i64: 32, 1536>}, {pipeline_mode = #tpu.pipeline_mode<synchronous>, transform_indices = @transform_3, window_bounds = array<i64: 512, 32>}, {pipeline_mode = #tpu.pipeline_mode<synchronous>, transform_indices = @transform_4, window_bounds = array<i64: 32, 64>}, {pipeline_mode = #tpu.pipeline_mode<synchronous>, transform_indices = @transform_5, window_bounds = array<i64: 64, 32>}, {transform_indices = @transform_6, window_bounds = array<i64: 32, 32>}]} {
    %c0 = arith.constant 0 : index
    %c0_0 = arith.constant 0 : index
    %0 = vector.load %arg2[%c0, %c0_0] : memref<8x64xf32, #tpu.memory_space<vmem>>, vector<1x32xf32>
    %c1 = arith.constant 1 : index
    %c0_1 = arith.constant 0 : index
    %1 = vector.load %arg2[%c1, %c0_1] : memref<8x64xf32, #tpu.memory_space<vmem>>, vector<1x32xf32>
    %c2 = arith.constant 2 : index
    %c0_2 = arith.constant 0 : index
    %2 = vector.load %arg2[%c2, %c0_2] : memref<8x64xf32, #tpu.memory_space<vmem>>, vector<1x32xf32>
    %c3 = arith.constant 3 : index
    %c0_3 = arith.constant 0 : index
    %3 = vector.load %arg2[%c3, %c0_3] : memref<8x64xf32, #tpu.memory_space<vmem>>, vector<1x64xf32>
    %c4 = arith.constant 4 : index
    %c0_4 = arith.constant 0 : index
    %4 = vector.load %arg2[%c4, %c0_4] : memref<8x64xf32, #tpu.memory_space<vmem>>, vector<1x32xf32>
    %c0_5 = arith.constant 0 : index
    %c0_6 = arith.constant 0 : index
    %5 = vector.load %arg1[%c0_5, %c0_6] : memref<32x32xf32, #tpu.memory_space<vmem>>, vector<32x32xf32>
    %cst = arith.constant dense<0.000000e+00> : vector<32xf32>
    %6 = vector.multi_reduction <add>, %5, %cst [1] : vector<32x32xf32> to vector<32xf32>
    %7 = vector.shape_cast %6 : vector<32xf32> to vector<32x1xf32>
    %cst_7 = arith.constant 3.200000e+01 : f32
    %8 = vector.broadcast %cst_7 : f32 to vector<32x1xf32>
    %9 = arith.divf %7, %8 : vector<32x1xf32>
    %10 = vector.broadcast %9 : vector<32x1xf32> to vector<32x32xf32>
    %11 = arith.subf %5, %10 : vector<32x32xf32>
    %12 = arith.mulf %11, %11 : vector<32x32xf32>
    %cst_8 = arith.constant dense<0.000000e+00> : vector<32xf32>
    %13 = vector.multi_reduction <add>, %12, %cst_8 [1] : vector<32x32xf32> to vector<32xf32>
    %14 = vector.shape_cast %13 : vector<32xf32> to vector<32x1xf32>
    %cst_9 = arith.constant 3.200000e+01 : f32
    %15 = vector.broadcast %cst_9 : f32 to vector<32x1xf32>
    %16 = arith.divf %14, %15 : vector<32x1xf32>
    %cst_10 = arith.constant 9.99999974E-6 : f32
    %17 = vector.broadcast %cst_10 : f32 to vector<32x1xf32>
    %18 = arith.addf %16, %17 : vector<32x1xf32>
    %19 = math.rsqrt %18 : vector<32x1xf32>
    %20 = vector.broadcast %19 : vector<32x1xf32> to vector<32x32xf32>
    %21 = arith.mulf %11, %20 : vector<32x32xf32>
    %22 = vector.broadcast %0 : vector<1x32xf32> to vector<32x32xf32>
    %23 = arith.mulf %21, %22 : vector<32x32xf32>
    %24 = vector.broadcast %1 : vector<1x32xf32> to vector<32x32xf32>
    %25 = arith.addf %23, %24 : vector<32x32xf32>
    %26 = arith.truncf %25 : vector<32x32xf32> to vector<32x32xbf16>
    %c0_11 = arith.constant 0 : index
    %c0_12 = arith.constant 0 : index
    %27 = vector.load %arg3[%c0_11, %c0_12] : memref<32x1536xbf16, #tpu.memory_space<vmem>>, vector<32x1536xbf16>
    %cst_13 = arith.constant dense<0.000000e+00> : vector<32x1536xf32>
    %28 = tpu.matmul %26, %27, %cst_13 {dimension_numbers = #tpu.dot_dimension_numbers<[1], [0], [0], [1], [0, 0, 1, 1], [], []>} : vector<32x32xbf16>, vector<32x1536xbf16>, vector<32x1536xf32> -> vector<32x1536xf32>
    %29 = arith.truncf %28 : vector<32x1536xf32> to vector<32x1536xbf16>
    %30 = vector.extract_strided_slice %29 {offsets = [0, 0], sizes = [32, 512], strides = [1, 1]} : vector<32x1536xbf16> to vector<32x512xbf16>
    %31 = vector.shape_cast %30 : vector<32x512xbf16> to vector<4x8x512xbf16>
    %32 = vector.extract_strided_slice %29 {offsets = [0, 512], sizes = [32, 512], strides = [1, 1]} : vector<32x1536xbf16> to vector<32x512xbf16>
    %33 = vector.shape_cast %32 : vector<32x512xbf16> to vector<4x8x512xbf16>
    %34 = vector.extract_strided_slice %29 {offsets = [0, 1024], sizes = [32, 512], strides = [1, 1]} : vector<32x1536xbf16> to vector<32x512xbf16>
    %35 = vector.shape_cast %34 : vector<32x512xbf16> to vector<4x8x512xbf16>
    "tpu.trace_start"() <{level = 10 : i32, message = "bnd,bmd->bnm"}> : () -> ()
    %cst_14 = arith.constant dense<0.000000e+00> : vector<4x8x8xf32>
    %36 = tpu.matmul %31, %33, %cst_14 {dimension_numbers = #tpu.dot_dimension_numbers<[2], [2], [1], [1], [0, 0, 0, 1, 1, 1], [0], [0]>} : vector<4x8x512xbf16>, vector<4x8x512xbf16>, vector<4x8x8xf32> -> vector<4x8x8xf32>
    "tpu.trace_stop"() : () -> ()
    %cst_15 = arith.constant 1.250000e-01 : f32
    %37 = vector.broadcast %cst_15 : f32 to vector<4x8x8xf32>
    %38 = arith.mulf %36, %37 : vector<4x8x8xf32>
    %cst_16 = arith.constant dense<0xFF800000> : vector<4x8xf32>
    %39 = vector.multi_reduction <maximumf>, %38, %cst_16 [2] : vector<4x8x8xf32> to vector<4x8xf32>
    %40 = vector.shape_cast %39 : vector<4x8xf32> to vector<4x8x1xf32>
    %cst_17 = arith.constant dense<0xFF800000> : vector<4x1xf32>
    %41 = vector.multi_reduction <maximumf>, %40, %cst_17 [1] : vector<4x8x1xf32> to vector<4x1xf32>
    %42 = vector.shape_cast %41 : vector<4x1xf32> to vector<4x1x1xf32>
    %43 = vector.broadcast %42 : vector<4x1x1xf32> to vector<4x8x8xf32>
    %44 = arith.subf %38, %43 : vector<4x8x8xf32>
    %45 = math.exp %44 : vector<4x8x8xf32>
    %cst_18 = arith.constant dense<0.000000e+00> : vector<4x8xf32>
    %46 = vector.multi_reduction <add>, %45, %cst_18 [2] : vector<4x8x8xf32> to vector<4x8xf32>
    %47 = vector.shape_cast %46 : vector<4x8xf32> to vector<4x8x1xf32>
    %cst_19 = arith.constant dense<0.000000e+00> : vector<4x1xf32>
    %48 = vector.multi_reduction <add>, %47, %cst_19 [1] : vector<4x8x1xf32> to vector<4x1xf32>
    %49 = vector.shape_cast %48 : vector<4x1xf32> to vector<4x1x1xf32>
    %50 = arith.truncf %45 : vector<4x8x8xf32> to vector<4x8x8xbf16>
    "tpu.trace_start"() <{level = 10 : i32, message = "bnm,bmd->bnd"}> : () -> ()
    %cst_20 = arith.constant dense<0.000000e+00> : vector<4x8x512xf32>
    %51 = tpu.matmul %50, %35, %cst_20 {dimension_numbers = #tpu.dot_dimension_numbers<[2], [1], [1], [2], [0, 0, 0, 1, 1, 2], [0], [0]>} : vector<4x8x8xbf16>, vector<4x8x512xbf16>, vector<4x8x512xf32> -> vector<4x8x512xf32>
    "tpu.trace_stop"() : () -> ()
    %52 = tpu.reciprocal %49 {approx = true} : vector<4x1x1xf32> -> vector<4x1x1xf32>
    %53 = vector.broadcast %52 : vector<4x1x1xf32> to vector<4x8x512xf32>
    %54 = arith.mulf %51, %53 : vector<4x8x512xf32>
    %55 = vector.shape_cast %54 : vector<4x8x512xf32> to vector<32x512xf32>
    %56 = arith.truncf %55 : vector<32x512xf32> to vector<32x512xbf16>
    %c0_21 = arith.constant 0 : index
    %c0_22 = arith.constant 0 : index
    %57 = vector.load %arg4[%c0_21, %c0_22] : memref<512x32xbf16, #tpu.memory_space<vmem>>, vector<512x32xbf16>
    %cst_23 = arith.constant dense<0.000000e+00> : vector<32x32xf32>
    %58 = tpu.matmul %56, %57, %cst_23 {dimension_numbers = #tpu.dot_dimension_numbers<[1], [0], [0], [1], [0, 0, 1, 1], [], []>} : vector<32x512xbf16>, vector<512x32xbf16>, vector<32x32xf32> -> vector<32x32xf32>
    %59 = vector.broadcast %2 : vector<1x32xf32> to vector<32x32xf32>
    %60 = arith.addf %58, %59 : vector<32x32xf32>
    %61 = arith.addf %60, %5 : vector<32x32xf32>
    %cst_24 = arith.constant dense<0.000000e+00> : vector<32xf32>
    %62 = vector.multi_reduction <add>, %61, %cst_24 [1] : vector<32x32xf32> to vector<32xf32>
    %63 = vector.shape_cast %62 : vector<32xf32> to vector<32x1xf32>
    %cst_25 = arith.constant 3.200000e+01 : f32
    %64 = vector.broadcast %cst_25 : f32 to vector<32x1xf32>
    %65 = arith.divf %63, %64 : vector<32x1xf32>
    %66 = vector.broadcast %65 : vector<32x1xf32> to vector<32x32xf32>
    %67 = arith.subf %61, %66 : vector<32x32xf32>
    %68 = arith.mulf %67, %67 : vector<32x32xf32>
    %cst_26 = arith.constant dense<0.000000e+00> : vector<32xf32>
    %69 = vector.multi_reduction <add>, %68, %cst_26 [1] : vector<32x32xf32> to vector<32xf32>
    %70 = vector.shape_cast %69 : vector<32xf32> to vector<32x1xf32>
    %cst_27 = arith.constant 3.200000e+01 : f32
    %71 = vector.broadcast %cst_27 : f32 to vector<32x1xf32>
    %72 = arith.divf %70, %71 : vector<32x1xf32>
    %cst_28 = arith.constant 9.99999974E-6 : f32
    %73 = vector.broadcast %cst_28 : f32 to vector<32x1xf32>
    %74 = arith.addf %72, %73 : vector<32x1xf32>
    %75 = math.rsqrt %74 : vector<32x1xf32>
    %76 = vector.broadcast %75 : vector<32x1xf32> to vector<32x32xf32>
    %77 = arith.mulf %67, %76 : vector<32x32xf32>
    %78 = vector.broadcast %0 : vector<1x32xf32> to vector<32x32xf32>
    %79 = arith.mulf %77, %78 : vector<32x32xf32>
    %80 = vector.broadcast %1 : vector<1x32xf32> to vector<32x32xf32>
    %81 = arith.addf %79, %80 : vector<32x32xf32>
    %82 = arith.truncf %81 : vector<32x32xf32> to vector<32x32xbf16>
    %c0_29 = arith.constant 0 : index
    %c0_30 = arith.constant 0 : index
    %83 = vector.load %arg5[%c0_29, %c0_30] : memref<32x64xbf16, #tpu.memory_space<vmem>>, vector<32x64xbf16>
    %cst_31 = arith.constant dense<0.000000e+00> : vector<32x64xf32>
    %84 = tpu.matmul %82, %83, %cst_31 {dimension_numbers = #tpu.dot_dimension_numbers<[1], [0], [0], [1], [0, 0, 1, 1], [], []>} : vector<32x32xbf16>, vector<32x64xbf16>, vector<32x64xf32> -> vector<32x64xf32>
    %85 = vector.broadcast %3 : vector<1x64xf32> to vector<32x64xf32>
    %86 = arith.addf %84, %85 : vector<32x64xf32>
    %cst_32 = arith.constant 0.000000e+00 : f32
    %87 = vector.broadcast %cst_32 : f32 to vector<32x64xf32>
    %88 = arith.maximumf %86, %87 : vector<32x64xf32>
    %89 = arith.truncf %88 : vector<32x64xf32> to vector<32x64xbf16>
    %c0_33 = arith.constant 0 : index
    %c0_34 = arith.constant 0 : index
    %90 = vector.load %arg6[%c0_33, %c0_34] : memref<64x32xbf16, #tpu.memory_space<vmem>>, vector<64x32xbf16>
    %cst_35 = arith.constant dense<0.000000e+00> : vector<32x32xf32>
    %91 = tpu.matmul %89, %90, %cst_35 {dimension_numbers = #tpu.dot_dimension_numbers<[1], [0], [0], [1], [0, 0, 1, 1], [], []>} : vector<32x64xbf16>, vector<64x32xbf16>, vector<32x32xf32> -> vector<32x32xf32>
    %92 = vector.broadcast %4 : vector<1x32xf32> to vector<32x32xf32>
    %93 = arith.addf %91, %92 : vector<32x32xf32>
    %94 = arith.addf %93, %61 : vector<32x32xf32>
    %c0_36 = arith.constant 0 : index
    %c0_37 = arith.constant 0 : index
    %95 = vector.load %arg7[%c0_36, %c0_37] : memref<32x32xf32, #tpu.memory_space<vmem>>, vector<32x32xf32>
    tpu.vector_store %arg7[%c0_36, %c0_37], %94 {strides = array<i32>} : memref<32x32xf32, #tpu.memory_space<vmem>>, vector<32x32xf32>,
    return
  }
  func.func @transform_0(%arg0: i32) -> (i32, i32) {
    %c0_i32 = arith.constant 0 : i32
    %c0_i32_0 = arith.constant 0 : i32
    return %arg0, %c0_i32 : i32, i32
  }
  func.func @transform_1(%arg0: i32) -> (i32, i32) {
    %c0_i32 = arith.constant 0 : i32
    %c0_i32_0 = arith.constant 0 : i32
    %c0_i32_1 = arith.constant 0 : i32
    return %c0_i32, %c0_i32_0 : i32, i32
  }
  func.func @transform_2(%arg0: i32) -> (i32, i32) {
    %c0_i32 = arith.constant 0 : i32
    %c0_i32_0 = arith.constant 0 : i32
    %c0_i32_1 = arith.constant 0 : i32
    return %c0_i32, %c0_i32_0 : i32, i32
  }
  func.func @transform_3(%arg0: i32) -> (i32, i32) {
    %c0_i32 = arith.constant 0 : i32
    %c0_i32_0 = arith.constant 0 : i32
    %c0_i32_1 = arith.constant 0 : i32
    return %c0_i32, %c0_i32_0 : i32, i32
  }
  func.func @transform_4(%arg0: i32) -> (i32, i32) {
    %c0_i32 = arith.constant 0 : i32
    %c0_i32_0 = arith.constant 0 : i32
    %c0_i32_1 = arith.constant 0 : i32
    return %c0_i32, %c0_i32_0 : i32, i32
  }
  func.func @transform_5(%arg0: i32) -> (i32, i32) {
    %c0_i32 = arith.constant 0 : i32
    %c0_i32_0 = arith.constant 0 : i32
    %c0_i32_1 = arith.constant 0 : i32
    return %c0_i32, %c0_i32_0 : i32, i32
  }
  func.func @transform_6(%arg0: i32) -> (i32, i32) {
    %c0_i32 = arith.constant 0 : i32
    %c0_i32_0 = arith.constant 0 : i32
    return %arg0, %c0_i32 : i32, i32
  }
}

</mosaic_0001>

<bundles_post_ra>
// kernel: tpu_custom_call.1
= control target key start
LH: loop header
LB: loop body
LE: loop exit
PB: predicated region body
PF: predicated region fallthrough
CT: control target
= control target key end

     0   :  { %s2945_s21 = smov 0   ;;  %s3398_s0 = inlined_call_operand.vmem [shape: f32[128,32], index: 0, kind: input, shape index: {}]   ;;  %s3399_s1 = inlined_call_operand.vmem [shape: f32[8,64], index: 1, kind: input, shape index: {}]   ;;  %s3400_s2 = inlined_call_operand.vmem [shape: bf16[32,1536], index: 2, kind: input, shape index: {}]   ;;  %s3401_s3 = inlined_call_operand.vmem [shape: bf16[512,32], index: 3, kind: input, shape index: {}]   ;;  %s3402_s4 = inlined_call_operand.vmem [shape: bf16[32,64], index: 4, kind: input, shape index: {}]   ;;  %s3403_s5 = inlined_call_operand.vmem [shape: bf16[64,32], index: 5, kind: input, shape index: {}]   ;;  %s3404_s6 = inlined_call_operand.vmem [shape: f32[128,32], index: 6, kind: output, shape index: {}]  }
   0x1 LB: > { %s2472_s22 = sadd.s32 4294967295, %s2907_s21   ;;  %p2476_p0 = scmp.ge.s32.totalorder %s2907_s21, 1  ;;  %s2907_s21 = sphi %s2945_s21, %s16_s21  }
   0x2   : > { %p213_p1 = scmp.lt.s32.totalorder %s2907_s21, 5 }
   0x4   : > { %p214_p2 = pnand %p2476_p0, %p213_p1 }
   0x5   : > { %s2477_s23 = sshll.u32 (!%p214_p2), %s2472_s22, 2  ;;  %vm265_vm0 = vcmask (!%p214_p2), 261120   ;;  %v2789_v28 = vld [vmem:[%s3400_s2 + $0x4] ss:$48 sps:$4 sm:$0xff] (!%p214_p2)   ;;  %v2791_v29 = vld [vmem:[%s3400_s2 + $0xc] ss:$48 sps:$4 sm:$0xff] (!%p214_p2)  }
   0x6   : > { %217 = sbr.rel (%p214_p2) target bundleno = 2199 (0x897), region = 44  ;;  %p244_p3 = scmp.lt.s32.totalorder (!%p214_p2), %s2477_s23, 15  ;;  %v2793_v30 = vld [vmem:[%s3400_s2] ss:$48 sps:$4 sm:$0xff] (!%p214_p2)   ;;  %v2794_v31 = vld [vmem:[%s3400_s2 + $0x8] ss:$48 sps:$4 sm:$0xff] (!%p214_p2)   ;;  %487 = vmatprep.subr.bf16.mxu0 (!%p214_p2), %v2789_v28  ;;  %540 = vmatprep.subr.bf16.mxu1 (!%p214_p2), %v2791_v29 }
   0x7   : > { %488 = vmatpush1.bf16.msra.mxu0 (!%p214_p2), %v2793_v30  ;;  %541 = vmatpush1.bf16.msra.mxu1 (!%p214_p2), %v2794_v31  ;;  %v2795_v32 = vld [vmem:[%s3400_s2 + $0x64] ss:$48 sps:$4 sm:$0xff] (!%p214_p2)   ;;  %v2797_v33 = vld [vmem:[%s3400_s2 + $0x6c] ss:$48 sps:$4 sm:$0xff] (!%p214_p2)   ;;  %v2799_v34 = vld [vmem:[%s3400_s2 + $0x60] ss:$48 sps:$4 sm:$0xff] (!%p214_p2)  }
   0x8   : > { %v2800_v35 = vld [vmem:[%s3400_s2 + $0x68] ss:$48 sps:$4 sm:$0xff] (!%p214_p2)   ;;  %489 = vmatprep.subr.bf16.mxu0 (!%p214_p2), %v2795_v32  ;;  %542 = vmatprep.subr.bf16.mxu1 (!%p214_p2), %v2797_v33  ;;  %v2909_v36 = vmov (!%p214_p2), 0   ;;  %v2803_v37 = vld [vmem:[%s3400_s2 + $0x14] ss:$48 sps:$4 sm:$0xff] (!%p214_p2)   ;;  %vm1385_vm1 = vcmask (!%p214_p2), 1043456  }
   0x9   : > { %519 = vmatprep.mubr.bf16.mxu0 (!%p214_p2), %v2909_v36  ;;  %572 = vmatprep.mubr.bf16.mxu1 (!%p214_p2), %v2909_v36  ;;  %v2806_v38 = vld [vmem:[%s3400_s2 + $0x1c] ss:$48 sps:$4 sm:$0xff] (!%p214_p2)   ;;  %v2481_v53 = vld [vmem:[%s3399_s1] ss:$0 sm:$0xff] (!%p214_p2)  ;;  %v2482_v58 = vld [vmem:[%s3399_s1 + $0x1] ss:$0 sm:$0xff] (!%p214_p2) }
   0xa   : > { %vm1289_vm2 = vcmask (!%p214_p2), 64512   ;;  %vm2352_vm3 = vcmask (!%p214_p2), 523264  }
   0xb   : > { %490 = vmatpush1.bf16.msra.mxu0 (!%p214_p2), %v2799_v34  ;;  %543 = vmatpush1.bf16.msra.mxu1 (!%p214_p2), %v2800_v35 }
   0xc   : > { %593 = vmatprep.subr.bf16.mxu0 (!%p214_p2), %v2803_v37  ;;  %646 = vmatprep.subr.bf16.mxu1 (!%p214_p2), %v2806_v38 }
   0xd   : > { %s3406_s23 = smov (!%p244_p3, %s2477_s23), 15 }
   0xe   : > { %s2478_s24 = sshll.u32 %s3406_s23, 3 }
   0xf   : > { %s2961_s27 = scalar_lea.vmem %s3398_s0, %s2478_s24  ;;  %s253_s25 = scalar_lea.vmem %s3404_s6, %s2478_s24 }
  0x10   : > { %v261_v0 = vld [vmem:[%s2961_s27] sm:$0xff]  ;;  %v263_v1 = vld [vmem:[%s2961_s27 + $0x10] sm:$0xff]  ;;  %v262_v2 = vld [vmem:[%s2961_s27 + $0x8] sm:$0xff] }
  0x11   : > { %v266_v3 = vsel %vm265_vm0, %v261_v0, 0.0  ;;  %v272_v4 = vsel %vm265_vm0, %v263_v1, 0.0  ;;  %v269_v5 = vsel %vm265_vm0, %v262_v2, 0.0  ;;  %v264_v6 = vld [vmem:[%s2961_s27 + $0x18] sm:$0xff] }
  0x12   : > { %267 = vadd.xlane.f32.xlu0 %v266_v3  ;;  %273 = vadd.xlane.f32.xlu1 %v272_v4  ;;  %v275_v7 = vsel %vm265_vm0, %v264_v6, 0.0  ;;  %v2801_v3 = vld [vmem:[%s3400_s2 + $0x10] ss:$48 sps:$4 sm:$0xff]   ;;  %v2804_v4 = vld [vmem:[%s3400_s2 + $0x18] ss:$48 sps:$4 sm:$0xff]  }
  0x16   : > { %270 = vadd.xlane.f32.xlu0 %v269_v5  ;;  %276 = vadd.xlane.f32.xlu1 %v275_v7  ;;  %v2809_v5 = vld [vmem:[%s3400_s2 + $0x74] ss:$48 sps:$4 sm:$0xff]  }
  0x9f   : > { %v268_v8 = vpop.xlane.xlu0 %267  ;;  %v274_v9 = vpop.xlane.xlu1 %273 }
  0xa0   : > { %v279_v10 = vmul.f32 0.03125, %v268_v8  ;;  %v281_v11 = vmul.f32 0.03125, %v274_v9  ;;  %v2807_v9 = vld [vmem:[%s3400_s2 + $0x70] ss:$48 sps:$4 sm:$0xff]  }
  0xa2   : > { %v283_v12 = vsub.f32 %v261_v0, %v279_v10  ;;  %v2971_v13 = vsub.f32 %v263_v1, %v281_v11  ;;  %v2810_v10 = vld [vmem:[%s3400_s2 + $0x78] ss:$48 sps:$4 sm:$0xff]   ;;  %v2815_v11 = vld [vmem:[%s3400_s2 + $0x24] ss:$48 sps:$4 sm:$0xff]  }
  0xa3   : > { %v271_v14 = vpop.xlane.xlu0 %270  ;;  %v277_v15 = vpop.xlane.xlu1 %276 }
  0xa4   : > { %v280_v16 = vmul.f32 0.03125, %v271_v14  ;;  %v282_v17 = vmul.f32 0.03125, %v277_v15  ;;  %v287_v18 = vmul.f32 %v283_v12, %v283_v12  ;;  %v289_v19 = vmul.f32 %v2971_v13, %v2971_v13  ;;  %v2813_v15 = vld [vmem:[%s3400_s2 + $0x20] ss:$48 sps:$4 sm:$0xff]  }
  0xa6   : > { %v284_v20 = vsub.f32 %v262_v2, %v280_v16  ;;  %v2975_v21 = vsub.f32 %v264_v6, %v282_v17  ;;  %v291_v22 = vsel %vm265_vm0, %v287_v18, 0.0  ;;  %v297_v23 = vsel %vm265_vm0, %v289_v19, 0.0  ;;  %v2812_v6 = vld [vmem:[%s3400_s2 + $0x7c] ss:$48 sps:$4 sm:$0xff]   ;;  %v2816_v16 = vld [vmem:[%s3400_s2 + $0x28] ss:$48 sps:$4 sm:$0xff]  }
  0xa7   : > { %292 = vadd.xlane.f32.xlu0 %v291_v22  ;;  %v2821_v17 = vld [vmem:[%s3400_s2 + $0x84] ss:$48 sps:$4 sm:$0xff]   ;;  %v2824_v18 = vld [vmem:[%s3400_s2 + $0x8c] ss:$48 sps:$4 sm:$0xff]   ;;  %v2819_v19 = vld [vmem:[%s3400_s2 + $0x80] ss:$48 sps:$4 sm:$0xff]  }
  0xa8   : > { %v288_v24 = vmul.f32 %v284_v20, %v284_v20  ;;  %v290_v25 = vmul.f32 %v2975_v21, %v2975_v21 }
  0xaa   : > { %v294_v26 = vsel %vm265_vm0, %v288_v24, 0.0  ;;  %v300_v27 = vsel %vm265_vm0, %v290_v25, 0.0 }
  0xab   : > { %298 = vadd.xlane.f32.xlu0 %v297_v23  ;;  %295 = vadd.xlane.f32.xlu1 %v294_v26 }
  0xaf   : > { %301 = vadd.xlane.f32.xlu1 %v300_v27 }
 0x134   : > { %v293_v39 = vpop.xlane.xlu0 %292 }
 0x135   : > { %v303_v40 = vmul.f32 0.03125, %v293_v39 }
 0x137   : > { %v307_v41 = vadd.f32 1e-05, %v303_v40 }
 0x138   : > { %v296_v42 = vpop.xlane.xlu1 %295  ;;  %v299_v43 = vpop.xlane.xlu0 %298 }
 0x139   : > { %2863 = vrsqrt.f32 %v307_v41  ;;  %v304_v44 = vmul.f32 0.03125, %v296_v42  ;;  %v305_v45 = vmul.f32 0.03125, %v299_v43 }
 0x13b   : > { %v308_v46 = vadd.f32 1e-05, %v304_v44  ;;  %v309_v47 = vadd.f32 1e-05, %v305_v45 }
 0x13c   : > { %v302_v48 = vpop.xlane.xlu1 %301 }
 0x13d   : > { %2865 = vrsqrt.f32 %v308_v46  ;;  %v306_v49 = vmul.f32 0.03125, %v302_v48 }
 0x13e   : > { %2867 = vrsqrt.f32 %v309_v47 }
 0x13f   : > { %v310_v50 = vadd.f32 1e-05, %v306_v49 }
 0x141   : > { %2869 = vrsqrt.f32 %v310_v50 }
 0x143   : > { %v2864_v51 = vpop.eup %2863 }
 0x144   : > { %v315_v52 = vmul.f32 %v2864_v51, %v283_v12  ;;  %v2818_v12 = vld [vmem:[%s3400_s2 + $0x2c] ss:$48 sps:$4 sm:$0xff]  }
 0x146   : > { %v323_v55 = vmul.f32 %v2481_v53, %v315_v52 }
 0x147   : > { %v2866_v54 = vpop.eup %2865 }
 0x148   : > { %v316_v56 = vmul.f32 %v2866_v54, %v284_v20  ;;  %v2868_v57 = vpop.eup %2867  ;;  %v331_v61 = vadd.f32 %v2482_v58, %v323_v55  ;;  %v2822_v20 = vld [vmem:[%s3400_s2 + $0x88] ss:$48 sps:$4 sm:$0xff]  }
 0x149   : > { %v317_v63 = vmul.f32 %v2868_v57, %v2971_v13 }
 0x14a   : > { %v324_v59 = vmul.f32 %v2481_v53, %v316_v56 }
 0x14b   : > { %v2870_v60 = vpop.eup %2869  ;;  %v325_v7 = vmul.f32 %v2481_v53, %v317_v63 }
 0x14c   : > { %v332_v62 = vadd.f32 %v2482_v58, %v324_v59  ;;  %v318_v0 = vmul.f32 %v2870_v60, %v2975_v21 }
 0x14d   : > { %v333_v13 = vadd.f32 %v2482_v58, %v325_v7 }
 0x14e   : > { %v326_v1 = vmul.f32 %v2481_v53, %v318_v0  ;;  %v335_v2 = vpack.c.bf16 %v332_v62, %v331_v61 }
 0x150   : > { %2507 = vmatmul.mubr.msk.bf16.vlgmr.msra.gmra.mrb[0].mxu0 %vm265_vm0, %v335_v2  ;;  %2509 = vmatmul.mubr.msk.bf16.vlgmr.msra.gmra.mrb[0].mxu1 %vm265_vm0, %v335_v2  ;;  %v334_v8 = vadd.f32 %v2482_v58, %v326_v1 }
 0x151   : > { %529 = vmatprep.mubr.bf16.mxu0 %v2909_v36  ;;  %582 = vmatprep.mubr.bf16.mxu1 %v2909_v36 }
 0x152   : > { %594 = vmatpush1.bf16.msra.mxu0 %v2801_v3  ;;  %647 = vmatpush1.bf16.msra.mxu1 %v2804_v4  ;;  %v336_v14 = vpack.c.bf16 %v334_v8, %v333_v13 }
 0x153   : > { %595 = vmatprep.subr.bf16.mxu0 %v2809_v5  ;;  %648 = vmatprep.subr.bf16.mxu1 %v2812_v6 }
 0x156   : > { %596 = vmatpush1.bf16.msra.mxu0 %v2807_v9  ;;  %649 = vmatpush1.bf16.msra.mxu1 %v2810_v10 }
 0x157   : > { %699 = vmatprep.subr.bf16.mxu0 %v2815_v11  ;;  %752 = vmatprep.subr.bf16.mxu1 %v2818_v12 }
 0x158   : > { %2508 = vmatmul.mubr.msk.bf16.gmra.mrb[4].mxu0 %vm265_vm0, %v336_v14  ;;  %2510 = vmatmul.mubr.msk.bf16.gmra.mrb[4].mxu1 %vm265_vm0, %v336_v14 }
 0x159   : > { %625 = vmatprep.mubr.bf16.mxu0 %v2909_v36  ;;  %678 = vmatprep.mubr.bf16.mxu1 %v2909_v36 }
 0x160   : > { %2511 = vmatmul.mubr.msk.bf16.vlgmr.msra.gmra.mrb[8].mxu0 %vm265_vm0, %v335_v2  ;;  %2513 = vmatmul.mubr.msk.bf16.vlgmr.msra.gmra.mrb[8].mxu1 %vm265_vm0, %v335_v2 }
 0x161   : > { %635 = vmatprep.mubr.bf16.mxu0 %v2909_v36  ;;  %688 = vmatprep.mubr.bf16.mxu1 %v2909_v36 }
 0x162   : > { %700 = vmatpush1.bf16.msra.mxu0 %v2813_v15  ;;  %753 = vmatpush1.bf16.msra.mxu1 %v2816_v16 }
 0x163   : > { %701 = vmatprep.subr.bf16.mxu0 %v2821_v17  ;;  %754 = vmatprep.subr.bf16.mxu1 %v2824_v18 }
 0x166   : > { %702 = vmatpush1.bf16.msra.mxu0 %v2819_v19  ;;  %755 = vmatpush1.bf16.msra.mxu1 %v2822_v20 }
 0x168   : > { %2512 = vmatmul.mubr.msk.bf16.gmra.mrb[12].mxu0 %vm265_vm0, %v336_v14  ;;  %2514 = vmatmul.mubr.msk.bf16.gmra.mrb[12].mxu1 %vm265_vm0, %v336_v14 }
 0x169   : > { %731 = vmatprep.mubr.bf16.mxu0 %v2909_v36  ;;  %784 = vmatprep.mubr.bf16.mxu1 %v2909_v36 }
 0x170   : > { %2515 = vmatmul.mubr.msk.bf16.vlgmr.msra.gmra.mrb[16].mxu0 %vm265_vm0, %v335_v2  ;;  %2517 = vmatmul.mubr.msk.bf16.vlgmr.msra.gmra.mrb[16].mxu1 %vm265_vm0, %v335_v2 }
 0x171   : > { %741 = vmatprep.mubr.bf16.mxu0 %v2909_v36  ;;  %794 = vmatprep.mubr.bf16.mxu1 %v2909_v36 }
 0x178   : > { %2516 = vmatmul.mubr.msk.bf16.gmra.mrb[20].mxu0 %vm265_vm0, %v336_v14  ;;  %2518 = vmatmul.mubr.msk.bf16.gmra.mrb[20].mxu1 %vm265_vm0, %v336_v14 }
 0x223   : > { %v521_v21 = vpop.f32.mrb[0].mxu0  ;;  %v3087_v22 = vpop.f32.mrb[0].mxu1 }
 0x224   : > { %v523_v23 = vpop.f32.mrb[1].mxu0  ;;  %v576_v24 = vpop.f32.mrb[1].mxu1  ;;  %v2630_v58 = vpack.c.bf16 %v521_v21, %v521_v21  ;;  %v2632_v14 = vpack.c.bf16 %v3087_v22, %v3087_v22 }
 0x225   : > { %v2631_v25 = vpack.c.bf16 %v523_v23, %v523_v23  ;;  %v525_v26 = vpop.f32.mrb[2].mxu0  ;;  %v3089_v27 = vpop.f32.mrb[2].mxu1  ;;  %v2633_v61 = vpack.c.bf16 %v576_v24, %v576_v24 }
 0x226   : > { %v527_v28 = vpop.f32.mrb[3].mxu0  ;;  %v580_v29 = vpop.f32.mrb[3].mxu1  ;;  %v2638_v1 = vpack.c.bf16 %v525_v26, %v525_v26  ;;  %v2640_v17 = vpack.c.bf16 %v3089_v27, %v3089_v27 }
 0x227   : > { %v2639_v30 = vpack.c.bf16 %v527_v28, %v527_v28  ;;  %949 = vmatprep.mubr.bf16.mxu0 %v2631_v25  ;;  %v2641_v3 = vpack.c.bf16 %v580_v29, %v580_v29 }
 0x229   : > { %1045 = vmatprep.mubr.bf16.mxu1 %v2639_v30 }
 0x22b   : > { %v3091_v31 = vpop.f32.mrb[4].mxu0  ;;  %v3093_v32 = vpop.f32.mrb[4].mxu1 }
 0x22c   : > { %v3095_v33 = vpop.f32.mrb[5].mxu0  ;;  %v3097_v34 = vpop.f32.mrb[5].mxu1  ;;  %v2646_v30 = vpack.c.bf16 %v3091_v31, %v3091_v31 }
 0x22d   : > { %v3099_v35 = vpop.f32.mrb[6].mxu0  ;;  %v3101_v37 = vpop.f32.mrb[6].mxu1  ;;  %v2647_v15 = vpack.c.bf16 %v3095_v33, %v3095_v33  ;;  %v2649_v33 = vpack.c.bf16 %v3097_v34, %v3097_v34 }
 0x22e   : > { %v3103_v38 = vpop.f32.mrb[7].mxu0  ;;  %v3105_v39 = vpop.f32.mrb[7].mxu1 }
 0x22f   : > { %v2655_v21 = vpack.c.bf16 %v3103_v38, %v3103_v38 }
 0x233   : > { %v627_v40 = vpop.f32.mrb[8].mxu0  ;;  %v680_v41 = vpop.f32.mrb[8].mxu1 }
 0x234   : > { %v629_v42 = vpop.f32.mrb[9].mxu0  ;;  %v682_v43 = vpop.f32.mrb[9].mxu1  ;;  %v2634_v47 = vpack.c.bf16 %v627_v40, %v627_v40  ;;  %v2636_v62 = vpack.c.bf16 %v680_v41, %v680_v41  ;;  %v2654_v40 = vpack.c.bf16 %v3099_v35, %v3099_v35  ;;  %v2648_v35 = vpack.c.bf16 %v3093_v32, %v3093_v32 }
 0x235   : > { %v2635_v44 = vpack.c.bf16 %v629_v42, %v629_v42  ;;  %v631_v45 = vpop.f32.mrb[10].mxu0  ;;  %v684_v46 = vpop.f32.mrb[10].mxu1  ;;  %v2637_v50 = vpack.c.bf16 %v682_v43, %v682_v43  ;;  %v2657_v42 = vpack.c.bf16 %v3105_v39, %v3105_v39  ;;  %v2656_v39 = vpack.c.bf16 %v3101_v37, %v3101_v37 }
 0x236   : > { %v633_v48 = vpop.f32.mrb[11].mxu0  ;;  %v686_v49 = vpop.f32.mrb[11].mxu1  ;;  %v2642_v52 = vpack.c.bf16 %v631_v45, %v631_v45  ;;  %v2644_v4 = vpack.c.bf16 %v684_v46, %v684_v46 }
 0x237   : > { %v2643_v51 = vpack.c.bf16 %v633_v48, %v633_v48  ;;  %917 = vmatprep.subr.bf16.mxu0 %v2635_v44  ;;  %v2645_v53 = vpack.c.bf16 %v686_v49, %v686_v49 }
 0x238   : > { %918 = vmatpush1.bf16.xpose.msra.mxu0 %v2634_v47 }
 0x239   : > { %957 = vmatprep.subr.bf16.mxu0 %v2637_v50  ;;  %1013 = vmatprep.subr.bf16.mxu1 %v2643_v51 }
 0x23a   : > { %1014 = vmatpush1.bf16.xpose.msra.mxu1 %v2642_v52 }
 0x23b   : > { %v637_v54 = vpop.f32.mrb[12].mxu0  ;;  %v3107_v55 = vpop.f32.mrb[12].mxu1  ;;  %1053 = vmatprep.subr.bf16.mxu1 %v2645_v53 }
 0x23c   : > { %v639_v56 = vpop.f32.mrb[13].mxu0  ;;  %v692_v57 = vpop.f32.mrb[13].mxu1  ;;  %v2650_v16 = vpack.c.bf16 %v637_v54, %v637_v54  ;;  %v2652_v38 = vpack.c.bf16 %v3107_v55, %v3107_v55 }
 0x23d   : > { %v641_v59 = vpop.f32.mrb[14].mxu0  ;;  %v3109_v60 = vpop.f32.mrb[14].mxu1  ;;  %v2651_v2 = vpack.c.bf16 %v639_v56, %v639_v56  ;;  %v2653_v18 = vpack.c.bf16 %v692_v57, %v692_v57 }
 0x23e   : > { %v643_v63 = vpop.f32.mrb[15].mxu0  ;;  %v696_v0 = vpop.f32.mrb[15].mxu1  ;;  %v2658_v23 = vpack.c.bf16 %v641_v59, %v641_v59  ;;  %v2660_v43 = vpack.c.bf16 %v3109_v60, %v3109_v60 }
 0x23f   : > { %950 = vmatmul.mubr.bf16.vlgmr.msra.gmra.mrb[24].mxu0 %v2630_v58  ;;  %v2659_v5 = vpack.c.bf16 %v643_v63, %v643_v63  ;;  %v2661_v25 = vpack.c.bf16 %v696_v0, %v696_v0 }
 0x240   : > { %958 = vmatpush1.bf16.xpose.msra.mxu0 %v2636_v62  ;;  %989 = vmatprep.mubr.bf16.mxu0 %v2633_v61 }
 0x241   : > { %1046 = vmatmul.mubr.bf16.vlgmr.msra.gmra.mrb[24].mxu1 %v2638_v1  ;;  %1109 = vmatprep.subr.bf16.mxu0 %v2651_v2 }
 0x242   : > { %1054 = vmatpush1.bf16.xpose.msra.mxu1 %v2644_v4  ;;  %1085 = vmatprep.mubr.bf16.mxu1 %v2641_v3 }
 0x243   : > { %v733_v6 = vpop.f32.mrb[16].mxu0  ;;  %v786_v7 = vpop.f32.mrb[16].mxu1  ;;  %1205 = vmatprep.subr.bf16.mxu1 %v2659_v5 }
 0x244   : > { %v735_v8 = vpop.f32.mrb[17].mxu0  ;;  %v788_v9 = vpop.f32.mrb[17].mxu1  ;;  %v2662_v34 = vpack.c.bf16 %v733_v6, %v733_v6  ;;  %v2664_v44 = vpack.c.bf16 %v786_v7, %v786_v7 }
 0x245   : > { %v3111_v10 = vpop.f32.mrb[18].mxu0  ;;  %v3113_v11 = vpop.f32.mrb[18].mxu1  ;;  %v2663_v41 = vpack.c.bf16 %v735_v8, %v735_v8  ;;  %v2665_v31 = vpack.c.bf16 %v788_v9, %v788_v9 }
 0x246   : > { %v739_v12 = vpop.f32.mrb[19].mxu0  ;;  %v792_v13 = vpop.f32.mrb[19].mxu1  ;;  %v1387_v45 = vsel %vm1385_vm1, %v2662_v34, 0  ;;  %v1393_v47 = vsel %vm1385_vm1, %v2664_v44, 0 }
 0x247   : > { %v2667_v46 = vpack.c.bf16 %v739_v12, %v739_v12  ;;  %v2669_v48 = vpack.c.bf16 %v792_v13, %v792_v13 }
 0x24b   : > { %v3121_v19 = vpop.f32.mrb[20].mxu0  ;;  %v3123_v20 = vpop.f32.mrb[20].mxu1  ;;  %990 = vmatmul.mubr.bf16.vlgmr.msra.gmra.mrb[24].mxu0 %v2632_v14 }
 0x24c   : > { %1110 = vmatpush1.bf16.xpose.msra.mxu0 %v2650_v16  ;;  %v3127_v24 = vpop.f32.mrb[21].mxu0  ;;  %v3129_v22 = vpop.f32.mrb[21].mxu1  ;;  %1141 = vmatprep.mubr.bf16.mxu0 %v2647_v15 }
 0x24d   : > { %1149 = vmatprep.subr.bf16.mxu0 %v2653_v18  ;;  %v3131_v26 = vpop.f32.mrb[22].mxu0  ;;  %v3133_v27 = vpop.f32.mrb[22].mxu1  ;;  %1086 = vmatmul.mubr.bf16.vlgmr.msra.gmra.mrb[24].mxu1 %v2640_v17 }
 0x24e   : > { %1206 = vmatpush1.bf16.xpose.msra.mxu1 %v2658_v23  ;;  %v3135_v28 = vpop.f32.mrb[23].mxu0  ;;  %v3137_v29 = vpop.f32.mrb[23].mxu1  ;;  %1237 = vmatprep.mubr.bf16.mxu1 %v2655_v21 }
 0x24f   : > { %1245 = vmatprep.subr.bf16.mxu1 %v2661_v25 }
 0x253   : > { %1142 = vmatmul.mubr.bf16.vlgmr.msra.gmra.mrb[28].mxu0 %v2646_v30 }
 0x254   : > { %1150 = vmatpush1.bf16.xpose.msra.mxu0 %v2652_v38  ;;  %1181 = vmatprep.mubr.bf16.mxu0 %v2649_v33 }
 0x255   : > { %2555 = vmatprep.subr.msk.bf16.mxu0 %vm1385_vm1, %v2663_v41  ;;  %1238 = vmatmul.mubr.bf16.vlgmr.msra.gmra.mrb[28].mxu1 %v2654_v40 }
 0x256   : > { %1246 = vmatpush1.bf16.xpose.msra.mxu1 %v2660_v43  ;;  %1277 = vmatprep.mubr.bf16.mxu1 %v2657_v42 }
 0x257   : > { %2557 = vmatprep.subr.msk.bf16.mxu1 %vm1385_vm1, %v2665_v31 }
 0x25f   : > { %1182 = vmatmul.mubr.bf16.vlgmr.msra.gmra.mrb[28].mxu0 %v2648_v35 }
 0x260   : > { %1399 = vmatpush1.bf16.msra.mxu0 %v1387_v45  ;;  %1430 = vmatprep.mubr.bf16.mxu0 %v2909_v36  ;;  %v2666_v45 = vpack.c.bf16 %v3111_v10, %v3111_v10  ;;  %v2671_v10 = vpack.c.bf16 %v3127_v24, %v3127_v24  ;;  %v2670_v24 = vpack.c.bf16 %v3121_v19, %v3121_v19 }
 0x261   : > { %2563 = vmatprep.subr.msk.bf16.mxu0 %vm1385_vm1, %v2667_v46  ;;  %1278 = vmatmul.mubr.bf16.vlgmr.msra.gmra.mrb[28].mxu1 %v2656_v39  ;;  %v2668_v46 = vpack.c.bf16 %v3113_v11, %v3113_v11  ;;  %v2677_v19 = vpack.c.bf16 %v3137_v29, %v3137_v29 }
 0x262   : > { %1440 = vmatpush1.bf16.msra.mxu1 %v1393_v47  ;;  %1471 = vmatprep.mubr.bf16.mxu1 %v2909_v36 }
 0x263   : > { %2565 = vmatprep.subr.msk.bf16.mxu1 %vm1385_vm1, %v2669_v48 }
 0x31e   : > { %v991_v32 = vpop.f32.mrb[24].mxu0 }
 0x31f   : > { %v1285_v37 = vmul.f32 0.125, %v991_v32  ;;  %v993_v49 = vpop.f32.mrb[25].mxu0 }
 0x320   : > { %v994_v50 = vpop.f32.mrb[26].mxu0  ;;  %v1087_v51 = vpop.f32.mrb[24].mxu1 }
 0x321   : > { %v1286_v52 = vmul.f32 0.125, %v1087_v51  ;;  %v995_v53 = vpop.f32.mrb[27].mxu0  ;;  %v1089_v54 = vpop.f32.mrb[25].mxu1  ;;  %v1290_v55 = vsel %vm1289_vm2, %v1285_v37, -inf }
 0x322   : > { %v1090_v56 = vpop.f32.mrb[26].mxu1  ;;  %1291 = vmax.xlane.f32.xlu0 %v1290_v55  ;;  %v1488_v53 = vsel %vm1385_vm1, %v2666_v45, 0  ;;  %v1494_v54 = vsel %vm1385_vm1, %v2668_v46, 0  ;;  %v2673_v55 = vpack.c.bf16 %v3129_v22, %v3129_v22  ;;  %v2672_v22 = vpack.c.bf16 %v3123_v20, %v3123_v20  ;;  %v2850_v45 = vld [vmem:[%s3401_s3 + $0xf0] sm:$0xff]  }
 0x323   : > { %v1091_v57 = vpop.f32.mrb[27].mxu1  ;;  %v1293_v58 = vsel %vm1289_vm2, %v1286_v52, -inf  ;;  %v2674_v20 = vpack.c.bf16 %v3131_v26, %v3131_v26  ;;  %v2851_v46 = vld [vmem:[%s3401_s3 + $0x30] sm:$0xff]  }
 0x324   : > { %1294 = vmax.xlane.f32.xlu1 %v1293_v58 }
 0x332   : > { %v1183_v59 = vpop.f32.mrb[28].mxu0 }
 0x333   : > { %v3165_v60 = vmul.f32 0.125, %v1183_v59  ;;  %v1185_v61 = vpop.f32.mrb[29].mxu0 }
 0x334   : > { %v1186_v62 = vpop.f32.mrb[30].mxu0  ;;  %v1279_v63 = vpop.f32.mrb[28].mxu1 }
 0x335   : > { %v3167_v0 = vmul.f32 0.125, %v1279_v63  ;;  %v1187_v1 = vpop.f32.mrb[31].mxu0  ;;  %v1281_v2 = vpop.f32.mrb[29].mxu1  ;;  %v1296_v3 = vsel %vm1289_vm2, %v3165_v60, -inf }
 0x336   : > { %v1282_v4 = vpop.f32.mrb[30].mxu1  ;;  %1297 = vmax.xlane.f32.xlu0 %v1296_v3  ;;  %v1595_v2 = vsel %vm1385_vm1, %v2672_v22, 0  ;;  %v2675_v3 = vpack.c.bf16 %v3135_v28, %v3135_v28  ;;  %v2676_v28 = vpack.c.bf16 %v3133_v27, %v3133_v27  ;;  %v2825_v27 = vld [vmem:[%s3401_s3 + $0x40] sm:$0xff]  }
 0x337   : > { %v1283_v5 = vpop.f32.mrb[31].mxu1  ;;  %v1299_v6 = vsel %vm1289_vm2, %v3167_v0, -inf }
 0x338   : > { %1300 = vmax.xlane.f32.xlu1 %v1299_v6  ;;  %v1690_v6 = vsel %vm1385_vm1, %v2674_v20, 0 }
 0x3af   : > { %v1292_v7 = vpop.xlane.xlu0 %1291 }
 0x3b0   : > { %v1302_v8 = vrot.slane %v1292_v7, 4 }
 0x3b1   : > { %v1295_v9 = vpop.xlane.xlu1 %1294 }
 0x3b2   : > { %v1303_v12 = vmax.f32 %v1292_v7, %v1302_v8  ;;  %v1308_v13 = vrot.slane %v1295_v9, 4  ;;  %v1696_v7 = vsel %vm1385_vm1, %v2676_v28, 0 }
 0x3b4   : > { %v1304_v14 = vrot.slane %v1303_v12, 2  ;;  %v1309_v15 = vmax.f32 %v1295_v9, %v1308_v13  ;;  %v2826_v9 = vld [vmem:[%s3401_s3 + $0xc0] sm:$0xff]   ;;  %v2829_v13 = vld [vmem:[%s3401_s3 + $0x48] sm:$0xff]  }
 0x3b6   : > { %v1305_v16 = vmax.f32 %v1303_v12, %v1304_v14  ;;  %v1310_v17 = vrot.slane %v1309_v15, 2  ;;  %v2827_v12 = vld [vmem:[%s3401_s3] sm:$0xff]   ;;  %v2830_v14 = vld [vmem:[%s3401_s3 + $0xc8] sm:$0xff]  }
 0x3b8   : > { %v1306_v18 = vrot.slane %v1305_v16, 1  ;;  %v1311_v21 = vmax.f32 %v1309_v15, %v1310_v17  ;;  %v2831_v15 = vld [vmem:[%s3401_s3 + $0x8] sm:$0xff]   ;;  %v2833_v17 = vld [vmem:[%s3401_s3 + $0x50] sm:$0xff]  }
 0x3ba   : > { %v1307_v23 = vmax.f32 %v1305_v16, %v1306_v18  ;;  %v1312_v25 = vrot.slane %v1311_v21, 1  ;;  %v2832_v16 = vld [vmem:[%s3401_s3 + $0x88] sm:$0xff]   ;;  %v2834_v18 = vld [vmem:[%s3401_s3 + $0xd0] sm:$0xff]  }
 0x3bc   : > { %v1326_v30 = vsub.f32 %v1285_v37, %v1307_v23  ;;  %v1313_v33 = vmax.f32 %v1311_v21, %v1312_v25  ;;  %v2835_v21 = vld [vmem:[%s3401_s3 + $0x10] sm:$0xff]   ;;  %v2837_v25 = vld [vmem:[%s3401_s3 + $0x58] sm:$0xff]  }
 0x3bd   : > { %v2836_v23 = vld [vmem:[%s3401_s3 + $0x90] sm:$0xff]  }
 0x3be   : > { %v1330_v38 = vmul.f32 1.442695, %v1326_v30  ;;  %v1327_v40 = vsub.f32 %v1286_v52, %v1313_v33  ;;  %v2838_v30 = vld [vmem:[%s3401_s3 + $0xd8] sm:$0xff]  }
 0x3bf   : > { %v2839_v33 = vld [vmem:[%s3401_s3 + $0x18] sm:$0xff]  }
 0x3c0   : > { %2871 = vpow2.f32 %v1330_v38  ;;  %v1332_v41 = vmul.f32 1.442695, %v1327_v40  ;;  %v2840_v38 = vld [vmem:[%s3401_s3 + $0x98] sm:$0xff]   ;;  %v2841_v40 = vld [vmem:[%s3401_s3 + $0x60] sm:$0xff]  }
 0x3c2   : > { %2873 = vpow2.f32 %v1332_v41  ;;  %v2842_v41 = vld [vmem:[%s3401_s3 + $0xe0] sm:$0xff]  }
 0x3c3   : > { %v1298_v42 = vpop.xlane.xlu0 %1297 }
 0x3c4   : > { %v1314_v43 = vrot.slane %v1298_v42, 4 }
 0x3c5   : > { %v1301_v31 = vpop.xlane.xlu1 %1300 }
 0x3c6   : > { %v1315_v34 = vmax.f32 %v1298_v42, %v1314_v43  ;;  %v1320_v35 = vrot.slane %v1301_v31, 4  ;;  %v2843_v42 = vld [vmem:[%s3401_s3 + $0x20] sm:$0xff]  }
 0x3c7   : > { %v2844_v43 = vld [vmem:[%s3401_s3 + $0xa0] sm:$0xff]  }
 0x3c8   : > { %v1316_v44 = vrot.slane %v1315_v34, 2  ;;  %v1321_v39 = vmax.f32 %v1301_v31, %v1320_v35  ;;  %v2845_v31 = vld [vmem:[%s3401_s3 + $0x68] sm:$0xff]  }
 0x3c9   : > { %v2847_v35 = vld [vmem:[%s3401_s3 + $0x28] sm:$0xff]  }
 0x3ca   : > { %v2872_v47 = vpop.eup %2871  ;;  %v1317_v48 = vmax.f32 %v1315_v34, %v1316_v44  ;;  %v1322_v32 = vrot.slane %v1321_v39, 2  ;;  %v2846_v34 = vld [vmem:[%s3401_s3 + $0xe8] sm:$0xff]  }
 0x3cb   : > { %v1338_v37 = vsel %vm1289_vm2, %v2872_v47, 0.0  ;;  %v1374_v49 = vpack.c.bf16 %v2872_v47, %v2872_v47  ;;  %v2848_v44 = vld [vmem:[%s3401_s3 + $0xa8] sm:$0xff]   ;;  %v2852_v47 = vld [vmem:[%s3401_s3 + $0xb0] sm:$0xff]  }
 0x3cc   : > { %v2874_v50 = vpop.eup %2873  ;;  %v1318_v51 = vrot.slane %v1317_v48, 1  ;;  %v1323_v52 = vmax.f32 %v1321_v39, %v1322_v32  ;;  %1339 = vadd.xlane.f32.xlu0 %v1338_v37  ;;  %v2849_v39 = vld [vmem:[%s3401_s3 + $0x70] sm:$0xff]   ;;  %v2854_v32 = vld [vmem:[%s3401_s3 + $0xf8] sm:$0xff]  }
 0x3cd   : > { %2556 = vmatmul.mubr.msk.bf16.vlgmr.msra.gmra.mrb[32].mxu0 %vm1289_vm2, %v1374_v49  ;;  %2558 = vmatmul.mubr.msk.bf16.vlgmr.msra.gmra.mrb[32].mxu1 %vm1289_vm2, %v1374_v49  ;;  %v1341_v11 = vsel %vm1289_vm2, %v2874_v50, 0.0  ;;  %v1375_v63 = vpack.c.bf16 %v2874_v50, %v2874_v50  ;;  %v2855_v37 = vld [vmem:[%s3401_s3 + $0x38] sm:$0xff]  }
 0x3ce   : > { %v1319_v56 = vmax.f32 %v1317_v48, %v1318_v51  ;;  %v1324_v57 = vrot.slane %v1323_v52, 1  ;;  %1500 = vmatpush1.bf16.msra.mxu0 %v1488_v53  ;;  %1541 = vmatpush1.bf16.msra.mxu1 %v1494_v54  ;;  %v2853_v48 = vld [vmem:[%s3401_s3 + $0x78] sm:$0xff]  }
 0x3cf   : > { %1342 = vadd.xlane.f32.xlu1 %v1341_v11  ;;  %2571 = vmatprep.subr.msk.bf16.mxu0 %vm1385_vm1, %v2671_v10  ;;  %v2856_v49 = vld [vmem:[%s3401_s3 + $0xb8] sm:$0xff]  }
 0x3d0   : > { %v1328_v58 = vsub.f32 %v3165_v60, %v1319_v56  ;;  %v1325_v59 = vmax.f32 %v1323_v52, %v1324_v57  ;;  %2573 = vmatprep.subr.msk.bf16.mxu1 %vm1385_vm1, %v2673_v55  ;;  %1531 = vmatprep.mubr.bf16.mxu0 %v2909_v36  ;;  %v1589_v60 = vsel %vm1385_vm1, %v2670_v24, 0 }
 0x3d1   : > { %1572 = vmatprep.mubr.bf16.mxu1 %v2909_v36 }
 0x3d2   : > { %v1334_v61 = vmul.f32 1.442695, %v1328_v58  ;;  %v1329_v62 = vsub.f32 %v3167_v0, %v1325_v59 }
 0x3d4   : > { %2875 = vpow2.f32 %v1334_v61  ;;  %v1336_v1 = vmul.f32 1.442695, %v1329_v62 }
 0x3d5   : > { %2564 = vmatmul.mubr.msk.bf16.vlgmr.msra.gmra.mrb[36].mxu0 %vm1289_vm2, %v1375_v63  ;;  %2566 = vmatmul.mubr.msk.bf16.vlgmr.msra.gmra.mrb[36].mxu1 %vm1289_vm2, %v1375_v63 }
 0x3d6   : > { %2877 = vpow2.f32 %v1336_v1  ;;  %1601 = vmatpush1.bf16.msra.mxu0 %v1589_v60  ;;  %1642 = vmatpush1.bf16.msra.mxu1 %v1595_v2 }
 0x3d7   : > { %2579 = vmatprep.subr.msk.bf16.mxu0 %vm1385_vm1, %v2675_v3  ;;  %2581 = vmatprep.subr.msk.bf16.mxu1 %vm1385_vm1, %v2677_v19 }
 0x3d8   : > { %1632 = vmatprep.mubr.bf16.mxu0 %v2909_v36  ;;  %1673 = vmatprep.mubr.bf16.mxu1 %v2909_v36 }
 0x3de   : > { %v2876_v29 = vpop.eup %2875 }
 0x3df   : > { %v1344_v0 = vsel %vm1289_vm2, %v2876_v29, 0.0  ;;  %v1376_v4 = vpack.c.bf16 %v2876_v29, %v2876_v29 }
 0x3e0   : > { %v2878_v5 = vpop.eup %2877  ;;  %1345 = vadd.xlane.f32.xlu0 %v1344_v0 }
 0x3e1   : > { %2572 = vmatmul.mubr.msk.bf16.vlgmr.msra.gmra.mrb[40].mxu0 %vm1289_vm2, %v1376_v4  ;;  %2574 = vmatmul.mubr.msk.bf16.vlgmr.msra.gmra.mrb[40].mxu1 %vm1289_vm2, %v1376_v4  ;;  %v1347_v8 = vsel %vm1289_vm2, %v2878_v5, 0.0  ;;  %v1377_v26 = vpack.c.bf16 %v2878_v5, %v2878_v5 }
 0x3e2   : > { %1702 = vmatpush1.bf16.msra.mxu0 %v1690_v6  ;;  %1743 = vmatpush1.bf16.msra.mxu1 %v1696_v7 }
 0x3e3   : > { %1348 = vadd.xlane.f32.xlu1 %v1347_v8  ;;  %1733 = vmatprep.mubr.bf16.mxu0 %v2909_v36 }
 0x3e4   : > { %1774 = vmatprep.mubr.bf16.mxu1 %v2909_v36  ;;  %v2828_v36 = vld [vmem:[%s3401_s3 + $0x80] sm:$0xff]   ;;  %2678 = vmatprep.subr.bf16.mxu0 %v2825_v27 }
 0x3e5   : > { %2706 = vmatprep.subr.bf16.mxu1 %v2826_v9 }
 0x3e9   : > { %2580 = vmatmul.mubr.msk.bf16.vlgmr.msra.gmra.mrb[44].mxu0 %vm1289_vm2, %v1377_v26  ;;  %2582 = vmatmul.mubr.msk.bf16.vlgmr.msra.gmra.mrb[44].mxu1 %vm1289_vm2, %v1377_v26 }
 0x3ea   : > { %2679 = vmatpush3.bf16.msra.mxu0 %v2827_v12  ;;  %2707 = vmatpush3.bf16.msra.mxu1 %v2828_v36 }
 0x3eb   : > { %2680 = vmatprep.subr.bf16.mxu0 %v2829_v13  ;;  %2708 = vmatprep.subr.bf16.mxu1 %v2830_v14 }
 0x3ee   : > { %2681 = vmatpush3.bf16.msra.mxu0 %v2831_v15  ;;  %2709 = vmatpush3.bf16.msra.mxu1 %v2832_v16 }
 0x3ef   : > { %2682 = vmatprep.subr.bf16.mxu0 %v2833_v17  ;;  %2710 = vmatprep.subr.bf16.mxu1 %v2834_v18 }
 0x3f2   : > { %2683 = vmatpush3.bf16.msra.mxu0 %v2835_v21  ;;  %2711 = vmatpush3.bf16.msra.mxu1 %v2836_v23 }
 0x3f3   : > { %2684 = vmatprep.subr.bf16.mxu0 %v2837_v25  ;;  %2712 = vmatprep.subr.bf16.mxu1 %v2838_v30 }
 0x3f6   : > { %2685 = vmatpush3.bf16.msra.mxu0 %v2839_v33  ;;  %2713 = vmatpush3.bf16.msra.mxu1 %v2840_v38 }
 0x3f7   : > { %2686 = vmatprep.subr.bf16.mxu0 %v2841_v40  ;;  %2714 = vmatprep.subr.bf16.mxu1 %v2842_v41 }
 0x3fa   : > { %2687 = vmatpush3.bf16.msra.mxu0 %v2843_v42  ;;  %2715 = vmatpush3.bf16.msra.mxu1 %v2844_v43 }
 0x3fb   : > { %2688 = vmatprep.subr.bf16.mxu0 %v2845_v31  ;;  %2716 = vmatprep.subr.bf16.mxu1 %v2846_v34 }
 0x3fe   : > { %2689 = vmatpush3.bf16.msra.mxu0 %v2847_v35  ;;  %2717 = vmatpush3.bf16.msra.mxu1 %v2848_v44 }
 0x3ff   : > { %2690 = vmatprep.subr.bf16.mxu0 %v2849_v39  ;;  %2718 = vmatprep.subr.bf16.mxu1 %v2850_v45 }
 0x402   : > { %2691 = vmatpush3.bf16.msra.mxu0 %v2851_v46  ;;  %2719 = vmatpush3.bf16.msra.mxu1 %v2852_v47 }
 0x403   : > { %2692 = vmatprep.subr.bf16.mxu0 %v2853_v48  ;;  %2720 = vmatprep.subr.bf16.mxu1 %v2854_v32 }
 0x406   : > { %2693 = vmatpush3.bf16.msra.mxu0 %v2855_v37  ;;  %2721 = vmatpush3.bf16.msra.mxu1 %v2856_v49 }
 0x459   : > { %v1340_v50 = vpop.xlane.xlu0 %1339 }
 0x45a   : > { %v1350_v52 = vrot.slane %v1340_v50, 4 }
 0x45c   : > { %v1343_v51 = vpop.xlane.xlu1 %1342  ;;  %v1351_v54 = vadd.f32 %v1350_v52, %v1340_v50 }
 0x45d   : > { %v1356_v53 = vrot.slane %v1343_v51, 4 }
 0x45e   : > { %v1352_v11 = vrot.slane %v1351_v54, 2 }
 0x45f   : > { %v1357_v10 = vadd.f32 %v1356_v53, %v1343_v51 }
 0x460   : > { %v1353_v56 = vadd.f32 %v1352_v11, %v1351_v54 }
 0x461   : > { %v1358_v55 = vrot.slane %v1357_v10, 2 }
 0x462   : > { %v1354_v58 = vrot.slane %v1353_v56, 1 }
 0x463   : > { %v1359_v57 = vadd.f32 %v1358_v55, %v1357_v10 }
 0x464   : > { %v1355_v63 = vadd.f32 %v1354_v58, %v1353_v56 }
 0x465   : > { %v1360_v22 = vrot.slane %v1359_v57, 1 }
 0x466   : > { %2879 = vrcp.f32 %v1355_v63 }
 0x467   : > { %v1361_v1 = vadd.f32 %v1360_v22, %v1359_v57 }
 0x469   : > { %2881 = vrcp.f32 %v1361_v1 }
 0x46d   : > { %v1346_v59 = vpop.xlane.xlu0 %1345 }
 0x46e   : > { %v1362_v61 = vrot.slane %v1346_v59, 4 }
 0x470   : > { %v1349_v24 = vpop.xlane.xlu1 %1348  ;;  %v1363_v60 = vadd.f32 %v1362_v61, %v1346_v59  ;;  %v2880_v27 = vpop.eup %2879 }
 0x471   : > { %v1368_v62 = vrot.slane %v1349_v24, 4 }
 0x472   : > { %v1364_v3 = vrot.slane %v1363_v60, 2 }
 0x473   : > { %v1369_v2 = vadd.f32 %v1368_v62, %v1349_v24  ;;  %v2882_v9 = vpop.eup %2881 }
 0x474   : > { %v1365_v8 = vadd.f32 %v1364_v3, %v1363_v60 }
 0x475   : > { %v1370_v19 = vrot.slane %v1369_v2, 2 }
 0x476   : > { %v1366_v12 = vrot.slane %v1365_v8, 1 }
 0x477   : > { %v1371_v26 = vadd.f32 %v1370_v19, %v1369_v2 }
 0x478   : > { %v1367_v39 = vadd.f32 %v1366_v12, %v1365_v8 }
 0x479   : > { %v1372_v36 = vrot.slane %v1371_v26, 1 }
 0x47a   : > { %2883 = vrcp.f32 %v1367_v39 }
 0x47b   : > { %v1373_v45 = vadd.f32 %v1372_v36, %v1371_v26 }
 0x47d   : > { %2885 = vrcp.f32 %v1373_v45 }
 0x484   : > { %v2884_v52 = vpop.eup %2883 }
 0x487   : > { %v2886_v53 = vpop.eup %2885 }
 0x4a0   : > { %v1432_v20 = vpop.f32.mrb[32].mxu0  ;;  %v1473_v28 = vpop.f32.mrb[32].mxu1 }
 0x4a1   : > { %v1434_v29 = vpop.f32.mrb[33].mxu0  ;;  %v1475_v0 = vpop.f32.mrb[33].mxu1  ;;  %v1787_v15 = vmul.f32 %v2880_v27, %v1432_v20  ;;  %v1789_v16 = vmul.f32 %v2880_v27, %v1473_v28 }
 0x4a2   : > { %v1436_v4 = vpop.f32.mrb[34].mxu0  ;;  %v1477_v5 = vpop.f32.mrb[34].mxu1  ;;  %v1788_v25 = vmul.f32 %v2880_v27, %v1434_v29  ;;  %v1790_v30 = vmul.f32 %v2880_v27, %v1475_v0 }
 0x4a3   : > { %v1437_v6 = vpop.f32.mrb[35].mxu0  ;;  %v1478_v7 = vpop.f32.mrb[35].mxu1  ;;  %v2583_v4 = vld [vmem:[%s3399_s1 + $0x2] ss:$0 sm:$0xff] }
 0x4a8   : > { %v1533_v13 = vpop.f32.mrb[36].mxu0  ;;  %v1574_v14 = vpop.f32.mrb[36].mxu1 }
 0x4a9   : > { %v1791_v17 = vmul.f32 %v2882_v9, %v1533_v13  ;;  %v1793_v18 = vmul.f32 %v2882_v9, %v1574_v14  ;;  %v1535_v21 = vpop.f32.mrb[37].mxu0  ;;  %v1576_v23 = vpop.f32.mrb[37].mxu1 }
 0x4aa   : > { %v1792_v33 = vmul.f32 %v2882_v9, %v1535_v21  ;;  %v1794_v38 = vmul.f32 %v2882_v9, %v1576_v23  ;;  %v1537_v40 = vpop.f32.mrb[38].mxu0  ;;  %v1578_v41 = vpop.f32.mrb[38].mxu1  ;;  %v2896_v23 = vld [vmem:[%s2961_s27 + $0x8] sm:$0xff] }
 0x4ab   : > { %v1803_v42 = vpack.c.bf16 %v1791_v17, %v1787_v15  ;;  %v1805_v43 = vpack.c.bf16 %v1793_v18, %v1789_v16  ;;  %v1538_v31 = vpop.f32.mrb[39].mxu0  ;;  %v1579_v34 = vpop.f32.mrb[39].mxu1  ;;  %v2895_v17 = vld [vmem:[%s2961_s27] sm:$0xff] }
 0x4ac   : > { %v1804_v35 = vpack.c.bf16 %v1792_v33, %v1788_v25  ;;  %v1806_v44 = vpack.c.bf16 %v1794_v38, %v1790_v30 }
 0x4ae   : > { %2103 = vmatprep.mubr.bf16.mxu0 %v1804_v35  ;;  %2152 = vmatprep.mubr.bf16.mxu1 %v1806_v44 }
 0x4af   : > { %2104 = vmatmul.mubr.bf16.vlgmr.msra.gmra.mrb[48].mxu0 %v1803_v42  ;;  %2153 = vmatmul.mubr.bf16.vlgmr.msra.gmra.mrb[48].mxu1 %v1805_v43 }
 0x4b4   : > { %v1634_v46 = vpop.f32.mrb[40].mxu0  ;;  %v1675_v47 = vpop.f32.mrb[40].mxu1 }
 0x4b5   : > { %v1636_v48 = vpop.f32.mrb[41].mxu0  ;;  %v1677_v32 = vpop.f32.mrb[41].mxu1  ;;  %v1795_v11 = vmul.f32 %v2884_v52, %v1634_v46  ;;  %v1797_v55 = vmul.f32 %v2884_v52, %v1675_v47 }
 0x4b6   : > { %v1638_v37 = vpop.f32.mrb[42].mxu0  ;;  %v1679_v49 = vpop.f32.mrb[42].mxu1  ;;  %v1796_v24 = vmul.f32 %v2884_v52, %v1636_v48  ;;  %v1798_v22 = vmul.f32 %v2884_v52, %v1677_v32 }
 0x4b7   : > { %v1639_v50 = vpop.f32.mrb[43].mxu0  ;;  %v1680_v51 = vpop.f32.mrb[43].mxu1  ;;  %v2897_v37 = vld [vmem:[%s2961_s27 + $0x10] sm:$0xff] }
 0x4b8   : > { %v2898_v51 = vld [vmem:[%s2961_s27 + $0x18] sm:$0xff] }
 0x4bc   : > { %v1735_v54 = vpop.f32.mrb[44].mxu0  ;;  %v1776_v10 = vpop.f32.mrb[44].mxu1 }
 0x4bd   : > { %v1799_v56 = vmul.f32 %v2886_v53, %v1735_v54  ;;  %v1801_v57 = vmul.f32 %v2886_v53, %v1776_v10  ;;  %v1737_v58 = vpop.f32.mrb[45].mxu0  ;;  %v1778_v59 = vpop.f32.mrb[45].mxu1 }
 0x4be   : > { %v1800_v61 = vmul.f32 %v2886_v53, %v1737_v58  ;;  %v1802_v62 = vmul.f32 %v2886_v53, %v1778_v59  ;;  %v1739_v63 = vpop.f32.mrb[46].mxu0  ;;  %v1780_v1 = vpop.f32.mrb[46].mxu1 }
 0x4bf   : > { %v1807_v60 = vpack.c.bf16 %v1799_v56, %v1795_v11  ;;  %v1809_v2 = vpack.c.bf16 %v1801_v57, %v1797_v55  ;;  %v1740_v3 = vpop.f32.mrb[47].mxu0  ;;  %v1781_v19 = vpop.f32.mrb[47].mxu1 }
 0x4c0   : > { %v1808_v20 = vpack.c.bf16 %v1800_v61, %v1796_v24  ;;  %v1810_v28 = vpack.c.bf16 %v1802_v62, %v1798_v22 }
 0x4c2   : > { %2111 = vmatprep.mubr.bf16.mxu0 %v1808_v20  ;;  %2160 = vmatprep.mubr.bf16.mxu1 %v1810_v28 }
 0x4c3   : > { %2112 = vmatmul.mubr.bf16.gmra.mrb[52].mxu0 %v1807_v60  ;;  %2161 = vmatmul.mubr.bf16.gmra.mrb[52].mxu1 %v1809_v2 }
 0x582   : > { %v2694_v29 = vpop.f32.mrb[48].mxu0  ;;  %v2722_v0 = vpop.f32.mrb[48].mxu1 }
 0x583   : > { %v2695_v5 = vpop.f32.mrb[49].mxu0  ;;  %v2723_v6 = vpop.f32.mrb[49].mxu1 }
 0x584   : > { %v2696_v7 = vadd.f32 %v2695_v5, %v2694_v29  ;;  %v2724_v8 = vadd.f32 %v2723_v6, %v2722_v0  ;;  %v2697_v26 = vpop.f32.mrb[50].mxu0  ;;  %v2725_v27 = vpop.f32.mrb[50].mxu1  ;;  %v2857_v0 = vld [vmem:[%s3402_s4] sm:$0xff]   ;;  %v2860_v6 = vld [vmem:[%s3403_s5 + $0x8] sm:$0xff]  }
 0x585   : > { %v2698_v9 = vpop.f32.mrb[51].mxu0  ;;  %v2726_v12 = vpop.f32.mrb[51].mxu1  ;;  %2744 = vmatprep.subr.bf16.mxu0 %v2857_v0  ;;  %v2859_v5 = vld [vmem:[%s3403_s5] sm:$0xff]  }
 0x586   : > { %v2106_v36 = vadd.f32 %v2696_v7, %v2583_v4  ;;  %v2699_v13 = vadd.f32 %v2698_v9, %v2697_v26  ;;  %v2727_v14 = vadd.f32 %v2726_v12, %v2725_v27  ;;  %2745 = vmatpush3.bf16.msra.mxu0 %v2857_v0  ;;  %2752 = vmatprep.subr.bf16.mxu1 %v2859_v5 }
 0x587   : > { %2753 = vmatpush3.bf16.msra.mxu1 %v2859_v5 }
 0x588   : > { %v2155_v15 = vadd.f32 %v2724_v8, %v2106_v36  ;;  %v2109_v16 = vadd.f32 %v2699_v13, %v2583_v4  ;;  %2754 = vmatprep.subr.bf16.mxu1 %v2860_v6 }
 0x58a   : > { %v3323_v18 = vadd.f32 %v2895_v17, %v2155_v15  ;;  %v2158_v21 = vadd.f32 %v2727_v14, %v2109_v16  ;;  %v2899_v16 = vld [vmem:[%s3399_s1] ss:$0 sm:$0xff] }
 0x58b   : > { %2755 = vmatpush3.bf16.msra.mxu1 %v2860_v6 }
 0x58c   : > { %v3326_v25 = vadd.f32 %v2896_v23, %v2158_v21  ;;  %v2173_v30 = vsel %vm265_vm0, %v3323_v18, 0.0 }
 0x58d   : > { %2174 = vadd.xlane.f32.xlu0 %v2173_v30 }
 0x58e   : > { %v2176_v33 = vsel %vm265_vm0, %v3326_v25, 0.0 }
 0x58f   : > { %2177 = vadd.xlane.f32.xlu1 %v2176_v33 }
 0x596   : > { %v2700_v38 = vpop.f32.mrb[52].mxu0  ;;  %v2728_v40 = vpop.f32.mrb[52].mxu1 }
 0x597   : > { %v2701_v41 = vpop.f32.mrb[53].mxu0  ;;  %v2729_v42 = vpop.f32.mrb[53].mxu1 }
 0x598   : > { %v2702_v43 = vadd.f32 %v2701_v41, %v2700_v38  ;;  %v2730_v31 = vadd.f32 %v2729_v42, %v2728_v40  ;;  %v2703_v34 = vpop.f32.mrb[54].mxu0  ;;  %v2731_v35 = vpop.f32.mrb[54].mxu1  ;;  %v2900_v38 = vld [vmem:[%s3399_s1 + $0x1] ss:$0 sm:$0xff] }
 0x599   : > { %v2704_v44 = vpop.f32.mrb[55].mxu0  ;;  %v2732_v39 = vpop.f32.mrb[55].mxu1 }
 0x59a   : > { %v2114_v45 = vadd.f32 %v2702_v43, %v2583_v4  ;;  %v2705_v46 = vadd.f32 %v2704_v44, %v2703_v34  ;;  %v2733_v47 = vadd.f32 %v2732_v39, %v2731_v35 }
 0x59c   : > { %v2163_v48 = vadd.f32 %v2730_v31, %v2114_v45  ;;  %v2117_v32 = vadd.f32 %v2705_v46, %v2583_v4  ;;  %v2858_v4 = vld [vmem:[%s3402_s4 + $0x8] sm:$0xff]  }
 0x59d   : > { %2746 = vmatprep.subr.bf16.mxu0 %v2858_v4 }
 0x59e   : > { %v3333_v49 = vadd.f32 %v2897_v37, %v2163_v48  ;;  %v2166_v50 = vadd.f32 %v2733_v47, %v2117_v32  ;;  %2747 = vmatpush3.bf16.msra.mxu0 %v2858_v4 }
 0x5a0   : > { %v3336_v52 = vadd.f32 %v2898_v51, %v2166_v50  ;;  %v2179_v53 = vsel %vm265_vm0, %v3333_v49, 0.0  ;;  %v2861_v50 = vld [vmem:[%s3403_s5 + $0x10] sm:$0xff]   ;;  %v2862_v51 = vld [vmem:[%s3403_s5 + $0x18] sm:$0xff]  }
 0x5a1   : > { %2180 = vadd.xlane.f32.xlu0 %v2179_v53  ;;  %2756 = vmatprep.subr.bf16.mxu1 %v2861_v50  ;;  %v2616_v53 = vld [vmem:[%s3399_s1 + $0x3] ss:$0 sm:$0xff] }
 0x5a2   : > { %v2182_v54 = vsel %vm265_vm0, %v3336_v52, 0.0  ;;  %2757 = vmatpush3.bf16.msra.mxu1 %v2861_v50 }
 0x5a3   : > { %2183 = vadd.xlane.f32.xlu1 %v2182_v54  ;;  %2758 = vmatprep.subr.bf16.mxu1 %v2862_v51 }
 0x5a6   : > { %2759 = vmatpush3.bf16.msra.mxu1 %v2862_v51 }
 0x61a   : > { %v2175_v10 = vpop.xlane.xlu0 %2174 }
 0x61b   : > { %v2185_v11 = vmul.f32 0.03125, %v2175_v10 }
 0x61c   : > { %v2178_v55 = vpop.xlane.xlu1 %2177 }
 0x61d   : > { %v2189_v56 = vsub.f32 %v3323_v18, %v2185_v11  ;;  %v2186_v57 = vmul.f32 0.03125, %v2178_v55 }
 0x61f   : > { %v2190_v58 = vsub.f32 %v3326_v25, %v2186_v57  ;;  %v2193_v59 = vmul.f32 %v2189_v56, %v2189_v56 }
 0x621   : > { %v2197_v24 = vsel %vm265_vm0, %v2193_v59, 0.0  ;;  %v2194_v22 = vmul.f32 %v2190_v58, %v2190_v58 }
 0x622   : > { %2198 = vadd.xlane.f32.xlu0 %v2197_v24 }
 0x623   : > { %v2200_v61 = vsel %vm265_vm0, %v2194_v22, 0.0 }
 0x624   : > { %2201 = vadd.xlane.f32.xlu1 %v2200_v61 }
 0x62e   : > { %v2181_v62 = vpop.xlane.xlu0 %2180 }
 0x62f   : > { %v2187_v63 = vmul.f32 0.03125, %v2181_v62 }
 0x630   : > { %v2184_v1 = vpop.xlane.xlu1 %2183 }
 0x631   : > { %v2191_v60 = vsub.f32 %v3333_v49, %v2187_v63  ;;  %v2188_v2 = vmul.f32 0.03125, %v2184_v1 }
 0x633   : > { %v2192_v3 = vsub.f32 %v3336_v52, %v2188_v2  ;;  %v2195_v19 = vmul.f32 %v2191_v60, %v2191_v60 }
 0x635   : > { %v2203_v20 = vsel %vm265_vm0, %v2195_v19, 0.0  ;;  %v2196_v28 = vmul.f32 %v2192_v3, %v2192_v3 }
 0x636   : > { %2204 = vadd.xlane.f32.xlu0 %v2203_v20 }
 0x637   : > { %v2206_v29 = vsel %vm265_vm0, %v2196_v28, 0.0 }
 0x638   : > { %2207 = vadd.xlane.f32.xlu1 %v2206_v29 }
 0x6af   : > { %v2199_v7 = vpop.xlane.xlu0 %2198 }
 0x6b0   : > { %v2209_v8 = vmul.f32 0.03125, %v2199_v7 }
 0x6b1   : > { %v2202_v26 = vpop.xlane.xlu1 %2201 }
 0x6b2   : > { %v2213_v27 = vadd.f32 1e-05, %v2209_v8  ;;  %v2210_v9 = vmul.f32 0.03125, %v2202_v26 }
 0x6b4   : > { %2887 = vrsqrt.f32 %v2213_v27  ;;  %v2214_v12 = vadd.f32 1e-05, %v2210_v9 }
 0x6b6   : > { %2889 = vrsqrt.f32 %v2214_v12 }
 0x6be   : > { %v2888_v36 = vpop.eup %2887 }
 0x6bf   : > { %v2221_v13 = vmul.f32 %v2888_v36, %v2189_v56 }
 0x6c0   : > { %v2890_v14 = vpop.eup %2889 }
 0x6c1   : > { %v2222_v15 = vmul.f32 %v2890_v14, %v2190_v58  ;;  %v2225_v17 = vmul.f32 %v2899_v16, %v2221_v13 }
 0x6c3   : > { %v2205_v21 = vpop.xlane.xlu0 %2204  ;;  %v2226_v23 = vmul.f32 %v2899_v16, %v2222_v15  ;;  %v2229_v40 = vadd.f32 %v2900_v38, %v2225_v17 }
 0x6c4   : > { %v2211_v30 = vmul.f32 0.03125, %v2205_v21 }
 0x6c5   : > { %v2208_v33 = vpop.xlane.xlu1 %2207  ;;  %v2230_v41 = vadd.f32 %v2900_v38, %v2226_v23 }
 0x6c6   : > { %v2215_v42 = vadd.f32 1e-05, %v2211_v30  ;;  %v2212_v43 = vmul.f32 0.03125, %v2208_v33 }
 0x6c7   : > { %v2233_v31 = vpack.c.bf16 %v2230_v41, %v2229_v40 }
 0x6c8   : > { %2891 = vrsqrt.f32 %v2215_v42  ;;  %v2216_v34 = vadd.f32 1e-05, %v2212_v43 }
 0x6c9   : > { %2748 = vmatprep.mubr.msk.bf16.mxu0 %vm265_vm0, %v2233_v31 }
 0x6ca   : > { %2893 = vrsqrt.f32 %v2216_v34 }
 0x6d2   : > { %v2892_v35 = vpop.eup %2891 }
 0x6d3   : > { %v2223_v44 = vmul.f32 %v2892_v35, %v2191_v60  ;;  %v2621_v60 = vld [vmem:[%s3399_s1 + $0x4] ss:$0 sm:$0xff] }
 0x6d4   : > { %v2894_v39 = vpop.eup %2893 }
 0x6d5   : > { %v2227_v45 = vmul.f32 %v2899_v16, %v2223_v44  ;;  %v2224_v46 = vmul.f32 %v2894_v39, %v2192_v3 }
 0x6d7   : > { %v2228_v47 = vmul.f32 %v2899_v16, %v2224_v46  ;;  %v2231_v48 = vadd.f32 %v2900_v38, %v2227_v45 }
 0x6d9   : > { %v2232_v32 = vadd.f32 %v2900_v38, %v2228_v47 }
 0x6db   : > { %v2234_v37 = vpack.c.bf16 %v2232_v32, %v2231_v48 }
 0x6dd   : > { %2749 = vmatmul.mubr.msk.bf16.vlgmr.msra.gmra.mrb[56].mxu0 %vm265_vm0, %v2234_v37 }
 0x7b0   : > { %v2750_v54 = vpop.f32.mrb[56].mxu0 }
 0x7b1   : > { %v2304_v10 = vadd.f32 %v2750_v54, %v2616_v53  ;;  %v2295_v11 = vpop.f32.mrb[57].mxu0 }
 0x7b2   : > { %v2296_v55 = vadd.f32 %v2616_v53, %v2295_v11  ;;  %v2751_v56 = vpop.f32.mrb[58].mxu0 }
 0x7b3   : > { %v2307_v57 = vadd.f32 %v2751_v56, %v2616_v53  ;;  %v2298_v58 = vpop.f32.mrb[59].mxu0  ;;  %v2312_v24 = vmax.f32 %v2304_v10, 0.0 }
 0x7b4   : > { %v2299_v59 = vadd.f32 %v2616_v53, %v2298_v58  ;;  %v2310_v61 = vmax.f32 %v2296_v55, 0.0 }
 0x7b5   : > { %v2313_v22 = vmax.f32 %v2307_v57, 0.0 }
 0x7b6   : > { %v2311_v62 = vmax.f32 %v2299_v59, 0.0 }
 0x7b7   : > { %v2315_v63 = vpack.c.bf16 %v2313_v22, %v2312_v24 }
 0x7b8   : > { %v2314_v1 = vpack.c.bf16 %v2311_v62, %v2310_v61 }
 0x7ba   : > { %2760 = vmatprep.mubr.msk.bf16.mxu1 %vm2352_vm3, %v2314_v1 }
 0x7bb   : > { %2761 = vmatmul.mubr.msk.bf16.vlgmr.msra.gmra.mrb[56].mxu1 %vm2352_vm3, %v2315_v63 }
 0x88e   : > { %v2762_v2 = vpop.f32.mrb[56].mxu1 }
 0x88f   : > { %v2402_v3 = vadd.f32 %v2762_v2, %v2621_v60  ;;  %v2393_v19 = vpop.f32.mrb[57].mxu1 }
 0x890   : > { %v2394_v20 = vadd.f32 %v2621_v60, %v2393_v19  ;;  %v2763_v28 = vpop.f32.mrb[58].mxu1 }
 0x891   : > { %v2410_v29 = vadd.f32 %v2402_v3, %v3333_v49  ;;  %v2405_v0 = vadd.f32 %v2763_v28, %v2621_v60  ;;  %v2396_v4 = vpop.f32.mrb[59].mxu1 }
 0x892   : > { %v2408_v5 = vadd.f32 %v2394_v20, %v3323_v18  ;;  %v2397_v6 = vadd.f32 %v2621_v60, %v2396_v4 }
 0x893   : > { %2414 = vst.msk [vmem:[%s253_s25 + $0x10] sm:$0xff] %vm265_vm0, %v2410_v29  ;;  %v2411_v7 = vadd.f32 %v2405_v0, %v3336_v52 }
 0x894   : > { %2412 = vst.msk [vmem:[%s253_s25] sm:$0xff] %vm265_vm0, %v2408_v5  ;;  %v2409_v8 = vadd.f32 %v2397_v6, %v3326_v25 }
 0x895   : > { %2415 = vst.msk [vmem:[%s253_s25 + $0x18] sm:$0xff] %vm265_vm0, %v2411_v7 }
 0x896   : > { %2413 = vst.msk [vmem:[%s253_s25 + $0x8] sm:$0xff] %vm265_vm0, %v2409_v8 }
 0x897 PF: > { %s16_s21 = sadd.s32 1, %s2907_s21  }
 0x898   : > { %p13_p4 = scmp.ge.s32.totalorder %s16_s21, 6  }
 0x89a   :  { %15 = sbr.rel (!%p13_p4) target bundleno = 1 (0x1), region = 74 }

// kernel: tpu_custom_call.1
= control target key start
LH: loop header
LB: loop body
LE: loop exit
PB: predicated region body
PF: predicated region fallthrough
CT: control target
= control target key end

     0   :  { %s2945_s21 = smov 0   ;;  %s3398_s0 = inlined_call_operand.vmem [shape: f32[128,32], index: 0, kind: input, shape index: {}]   ;;  %s3399_s1 = inlined_call_operand.vmem [shape: f32[8,64], index: 1, kind: input, shape index: {}]   ;;  %s3400_s2 = inlined_call_operand.vmem [shape: bf16[32,1536], index: 2, kind: input, shape index: {}]   ;;  %s3401_s3 = inlined_call_operand.vmem [shape: bf16[512,32], index: 3, kind: input, shape index: {}]   ;;  %s3402_s4 = inlined_call_operand.vmem [shape: bf16[32,64], index: 4, kind: input, shape index: {}]   ;;  %s3403_s5 = inlined_call_operand.vmem [shape: bf16[64,32], index: 5, kind: input, shape index: {}]   ;;  %s3404_s6 = inlined_call_operand.vmem [shape: f32[128,32], index: 6, kind: output, shape index: {}]  }
   0x1 LB: > { %s2472_s22 = sadd.s32 4294967295, %s2907_s21   ;;  %p2476_p0 = scmp.ge.s32.totalorder %s2907_s21, 1  ;;  %s2907_s21 = sphi %s2945_s21, %s16_s21  }
   0x2   : > { %p213_p1 = scmp.lt.s32.totalorder %s2907_s21, 5 }
   0x4   : > { %p214_p2 = pnand %p2476_p0, %p213_p1 }
   0x5   : > { %s2477_s23 = sshll.u32 (!%p214_p2), %s2472_s22, 2  ;;  %vm265_vm0 = vcmask (!%p214_p2), 261120   ;;  %v2789_v28 = vld [vmem:[%s3400_s2 + $0x4] ss:$48 sps:$4 sm:$0xff] (!%p214_p2)   ;;  %v2791_v29 = vld [vmem:[%s3400_s2 + $0xc] ss:$48 sps:$4 sm:$0xff] (!%p214_p2)  }
   0x6   : > { %217 = sbr.rel (%p214_p2) target bundleno = 2199 (0x897), region = 44  ;;  %p244_p3 = scmp.lt.s32.totalorder (!%p214_p2), %s2477_s23, 15  ;;  %v2793_v30 = vld [vmem:[%s3400_s2] ss:$48 sps:$4 sm:$0xff] (!%p214_p2)   ;;  %v2794_v31 = vld [vmem:[%s3400_s2 + $0x8] ss:$48 sps:$4 sm:$0xff] (!%p214_p2)   ;;  %487 = vmatprep.subr.bf16.mxu0 (!%p214_p2), %v2789_v28  ;;  %540 = vmatprep.subr.bf16.mxu1 (!%p214_p2), %v2791_v29 }
   0x7   : > { %488 = vmatpush1.bf16.msra.mxu0 (!%p214_p2), %v2793_v30  ;;  %541 = vmatpush1.bf16.msra.mxu1 (!%p214_p2), %v2794_v31  ;;  %v2795_v32 = vld [vmem:[%s3400_s2 + $0x64] ss:$48 sps:$4 sm:$0xff] (!%p214_p2)   ;;  %v2797_v33 = vld [vmem:[%s3400_s2 + $0x6c] ss:$48 sps:$4 sm:$0xff] (!%p214_p2)   ;;  %v2799_v34 = vld [vmem:[%s3400_s2 + $0x60] ss:$48 sps:$4 sm:$0xff] (!%p214_p2)  }
   0x8   : > { %v2800_v35 = vld [vmem:[%s3400_s2 + $0x68] ss:$48 sps:$4 sm:$0xff] (!%p214_p2)   ;;  %489 = vmatprep.subr.bf16.mxu0 (!%p214_p2), %v2795_v32  ;;  %542 = vmatprep.subr.bf16.mxu1 (!%p214_p2), %v2797_v33  ;;  %v2909_v36 = vmov (!%p214_p2), 0   ;;  %v2803_v37 = vld [vmem:[%s3400_s2 + $0x14] ss:$48 sps:$4 sm:$0xff] (!%p214_p2)   ;;  %vm1385_vm1 = vcmask (!%p214_p2), 1043456  }
   0x9   : > { %519 = vmatprep.mubr.bf16.mxu0 (!%p214_p2), %v2909_v36  ;;  %572 = vmatprep.mubr.bf16.mxu1 (!%p214_p2), %v2909_v36  ;;  %v2806_v38 = vld [vmem:[%s3400_s2 + $0x1c] ss:$48 sps:$4 sm:$0xff] (!%p214_p2)   ;;  %v2481_v53 = vld [vmem:[%s3399_s1] ss:$0 sm:$0xff] (!%p214_p2)  ;;  %v2482_v58 = vld [vmem:[%s3399_s1 + $0x1] ss:$0 sm:$0xff] (!%p214_p2) }
   0xa   : > { %vm1289_vm2 = vcmask (!%p214_p2), 64512   ;;  %vm2352_vm3 = vcmask (!%p214_p2), 523264  }
   0xb   : > { %490 = vmatpush1.bf16.msra.mxu0 (!%p214_p2), %v2799_v34  ;;  %543 = vmatpush1.bf16.msra.mxu1 (!%p214_p2), %v2800_v35 }
   0xc   : > { %593 = vmatprep.subr.bf16.mxu0 (!%p214_p2), %v2803_v37  ;;  %646 = vmatprep.subr.bf16.mxu1 (!%p214_p2), %v2806_v38 }
   0xd   : > { %s3406_s23 = smov (!%p244_p3, %s2477_s23), 15 }
   0xe   : > { %s2478_s24 = sshll.u32 %s3406_s23, 3 }
   0xf   : > { %s2961_s27 = scalar_lea.vmem %s3398_s0, %s2478_s24  ;;  %s253_s25 = scalar_lea.vmem %s3404_s6, %s2478_s24 }
  0x10   : > { %v261_v0 = vld [vmem:[%s2961_s27] sm:$0xff]  ;;  %v263_v1 = vld [vmem:[%s2961_s27 + $0x10] sm:$0xff]  ;;  %v262_v2 = vld [vmem:[%s2961_s27 + $0x8] sm:$0xff] }
  0x11   : > { %v266_v3 = vsel %vm265_vm0, %v261_v0, 0.0  ;;  %v272_v4 = vsel %vm265_vm0, %v263_v1, 0.0  ;;  %v269_v5 = vsel %vm265_vm0, %v262_v2, 0.0  ;;  %v264_v6 = vld [vmem:[%s2961_s27 + $0x18] sm:$0xff] }
  0x12   : > { %267 = vadd.xlane.f32.xlu0 %v266_v3  ;;  %273 = vadd.xlane.f32.xlu1 %v272_v4  ;;  %v275_v7 = vsel %vm265_vm0, %v264_v6, 0.0  ;;  %v2801_v3 = vld [vmem:[%s3400_s2 + $0x10] ss:$48 sps:$4 sm:$0xff]   ;;  %v2804_v4 = vld [vmem:[%s3400_s2 + $0x18] ss:$48 sps:$4 sm:$0xff]  }
  0x16   : > { %270 = vadd.xlane.f32.xlu0 %v269_v5  ;;  %276 = vadd.xlane.f32.xlu1 %v275_v7  ;;  %v2809_v5 = vld [vmem:[%s3400_s2 + $0x74] ss:$48 sps:$4 sm:$0xff]  }
  0x9f   : > { %v268_v8 = vpop.xlane.xlu0 %267  ;;  %v274_v9 = vpop.xlane.xlu1 %273 }
  0xa0   : > { %v279_v10 = vmul.f32 0.03125, %v268_v8  ;;  %v281_v11 = vmul.f32 0.03125, %v274_v9  ;;  %v2807_v9 = vld [vmem:[%s3400_s2 + $0x70] ss:$48 sps:$4 sm:$0xff]  }
  0xa2   : > { %v283_v12 = vsub.f32 %v261_v0, %v279_v10  ;;  %v2971_v13 = vsub.f32 %v263_v1, %v281_v11  ;;  %v2810_v10 = vld [vmem:[%s3400_s2 + $0x78] ss:$48 sps:$4 sm:$0xff]   ;;  %v2815_v11 = vld [vmem:[%s3400_s2 + $0x24] ss:$48 sps:$4 sm:$0xff]  }
  0xa3   : > { %v271_v14 = vpop.xlane.xlu0 %270  ;;  %v277_v15 = vpop.xlane.xlu1 %276 }
  0xa4   : > { %v280_v16 = vmul.f32 0.03125, %v271_v14  ;;  %v282_v17 = vmul.f32 0.03125, %v277_v15  ;;  %v287_v18 = vmul.f32 %v283_v12, %v283_v12  ;;  %v289_v19 = vmul.f32 %v2971_v13, %v2971_v13  ;;  %v2813_v15 = vld [vmem:[%s3400_s2 + $0x20] ss:$48 sps:$4 sm:$0xff]  }
  0xa6   : > { %v284_v20 = vsub.f32 %v262_v2, %v280_v16  ;;  %v2975_v21 = vsub.f32 %v264_v6, %v282_v17  ;;  %v291_v22 = vsel %vm265_vm0, %v287_v18, 0.0  ;;  %v297_v23 = vsel %vm265_vm0, %v289_v19, 0.0  ;;  %v2812_v6 = vld [vmem:[%s3400_s2 + $0x7c] ss:$48 sps:$4 sm:$0xff]   ;;  %v2816_v16 = vld [vmem:[%s3400_s2 + $0x28] ss:$48 sps:$4 sm:$0xff]  }
  0xa7   : > { %292 = vadd.xlane.f32.xlu0 %v291_v22  ;;  %v2821_v17 = vld [vmem:[%s3400_s2 + $0x84] ss:$48 sps:$4 sm:$0xff]   ;;  %v2824_v18 = vld [vmem:[%s3400_s2 + $0x8c] ss:$48 sps:$4 sm:$0xff]   ;;  %v2819_v19 = vld [vmem:[%s3400_s2 + $0x80] ss:$48 sps:$4 sm:$0xff]  }
  0xa8   : > { %v288_v24 = vmul.f32 %v284_v20, %v284_v20  ;;  %v290_v25 = vmul.f32 %v2975_v21, %v2975_v21 }
  0xaa   : > { %v294_v26 = vsel %vm265_vm0, %v288_v24, 0.0  ;;  %v300_v27 = vsel %vm265_vm0, %v290_v25, 0.0 }
  0xab   : > { %298 = vadd.xlane.f32.xlu0 %v297_v23  ;;  %295 = vadd.xlane.f32.xlu1 %v294_v26 }
  0xaf   : > { %301 = vadd.xlane.f32.xlu1 %v300_v27 }
 0x134   : > { %v293_v39 = vpop.xlane.xlu0 %292 }
 0x135   : > { %v303_v40 = vmul.f32 0.03125, %v293_v39 }
 0x137   : > { %v307_v41 = vadd.f32 1e-05, %v303_v40 }
 0x138   : > { %v296_v42 = vpop.xlane.xlu1 %295  ;;  %v299_v43 = vpop.xlane.xlu0 %298 }
 0x139   : > { %2863 = vrsqrt.f32 %v307_v41  ;;  %v304_v44 = vmul.f32 0.03125, %v296_v42  ;;  %v305_v45 = vmul.f32 0.03125, %v299_v43 }
 0x13b   : > { %v308_v46 = vadd.f32 1e-05, %v304_v44  ;;  %v309_v47 = vadd.f32 1e-05, %v305_v45 }
 0x13c   : > { %v302_v48 = vpop.xlane.xlu1 %301 }
 0x13d   : > { %2865 = vrsqrt.f32 %v308_v46  ;;  %v306_v49 = vmul.f32 0.03125, %v302_v48 }
 0x13e   : > { %2867 = vrsqrt.f32 %v309_v47 }
 0x13f   : > { %v310_v50 = vadd.f32 1e-05, %v306_v49 }
 0x141   : > { %2869 = vrsqrt.f32 %v310_v50 }
 0x143   : > { %v2864_v51 = vpop.eup %2863 }
 0x144   : > { %v315_v52 = vmul.f32 %v2864_v51, %v283_v12  ;;  %v2818_v12 = vld [vmem:[%s3400_s2 + $0x2c] ss:$48 sps:$4 sm:$0xff]  }
 0x146   : > { %v323_v55 = vmul.f32 %v2481_v53, %v315_v52 }
 0x147   : > { %v2866_v54 = vpop.eup %2865 }
 0x148   : > { %v316_v56 = vmul.f32 %v2866_v54, %v284_v20  ;;  %v2868_v57 = vpop.eup %2867  ;;  %v331_v61 = vadd.f32 %v2482_v58, %v323_v55  ;;  %v2822_v20 = vld [vmem:[%s3400_s2 + $0x88] ss:$48 sps:$4 sm:$0xff]  }
 0x149   : > { %v317_v63 = vmul.f32 %v2868_v57, %v2971_v13 }
 0x14a   : > { %v324_v59 = vmul.f32 %v2481_v53, %v316_v56 }
 0x14b   : > { %v2870_v60 = vpop.eup %2869  ;;  %v325_v7 = vmul.f32 %v2481_v53, %v317_v63 }
 0x14c   : > { %v332_v62 = vadd.f32 %v2482_v58, %v324_v59  ;;  %v318_v0 = vmul.f32 %v2870_v60, %v2975_v21 }
 0x14d   : > { %v333_v13 = vadd.f32 %v2482_v58, %v325_v7 }
 0x14e   : > { %v326_v1 = vmul.f32 %v2481_v53, %v318_v0  ;;  %v335_v2 = vpack.c.bf16 %v332_v62, %v331_v61 }
 0x150   : > { %2507 = vmatmul.mubr.msk.bf16.vlgmr.msra.gmra.mrb[0].mxu0 %vm265_vm0, %v335_v2  ;;  %2509 = vmatmul.mubr.msk.bf16.vlgmr.msra.gmra.mrb[0].mxu1 %vm265_vm0, %v335_v2  ;;  %v334_v8 = vadd.f32 %v2482_v58, %v326_v1 }
 0x151   : > { %529 = vmatprep.mubr.bf16.mxu0 %v2909_v36  ;;  %582 = vmatprep.mubr.bf16.mxu1 %v2909_v36 }
 0x152   : > { %594 = vmatpush1.bf16.msra.mxu0 %v2801_v3  ;;  %647 = vmatpush1.bf16.msra.mxu1 %v2804_v4  ;;  %v336_v14 = vpack.c.bf16 %v334_v8, %v333_v13 }
 0x153   : > { %595 = vmatprep.subr.bf16.mxu0 %v2809_v5  ;;  %648 = vmatprep.subr.bf16.mxu1 %v2812_v6 }
 0x156   : > { %596 = vmatpush1.bf16.msra.mxu0 %v2807_v9  ;;  %649 = vmatpush1.bf16.msra.mxu1 %v2810_v10 }
 0x157   : > { %699 = vmatprep.subr.bf16.mxu0 %v2815_v11  ;;  %752 = vmatprep.subr.bf16.mxu1 %v2818_v12 }
 0x158   : > { %2508 = vmatmul.mubr.msk.bf16.gmra.mrb[4].mxu0 %vm265_vm0, %v336_v14  ;;  %2510 = vmatmul.mubr.msk.bf16.gmra.mrb[4].mxu1 %vm265_vm0, %v336_v14 }
 0x159   : > { %625 = vmatprep.mubr.bf16.mxu0 %v2909_v36  ;;  %678 = vmatprep.mubr.bf16.mxu1 %v2909_v36 }
 0x160   : > { %2511 = vmatmul.mubr.msk.bf16.vlgmr.msra.gmra.mrb[8].mxu0 %vm265_vm0, %v335_v2  ;;  %2513 = vmatmul.mubr.msk.bf16.vlgmr.msra.gmra.mrb[8].mxu1 %vm265_vm0, %v335_v2 }
 0x161   : > { %635 = vmatprep.mubr.bf16.mxu0 %v2909_v36  ;;  %688 = vmatprep.mubr.bf16.mxu1 %v2909_v36 }
 0x162   : > { %700 = vmatpush1.bf16.msra.mxu0 %v2813_v15  ;;  %753 = vmatpush1.bf16.msra.mxu1 %v2816_v16 }
 0x163   : > { %701 = vmatprep.subr.bf16.mxu0 %v2821_v17  ;;  %754 = vmatprep.subr.bf16.mxu1 %v2824_v18 }
 0x166   : > { %702 = vmatpush1.bf16.msra.mxu0 %v2819_v19  ;;  %755 = vmatpush1.bf16.msra.mxu1 %v2822_v20 }
 0x168   : > { %2512 = vmatmul.mubr.msk.bf16.gmra.mrb[12].mxu0 %vm265_vm0, %v336_v14  ;;  %2514 = vmatmul.mubr.msk.bf16.gmra.mrb[12].mxu1 %vm265_vm0, %v336_v14 }
 0x169   : > { %731 = vmatprep.mubr.bf16.mxu0 %v2909_v36  ;;  %784 = vmatprep.mubr.bf16.mxu1 %v2909_v36 }
 0x170   : > { %2515 = vmatmul.mubr.msk.bf16.vlgmr.msra.gmra.mrb[16].mxu0 %vm265_vm0, %v335_v2  ;;  %2517 = vmatmul.mubr.msk.bf16.vlgmr.msra.gmra.mrb[16].mxu1 %vm265_vm0, %v335_v2 }
 0x171   : > { %741 = vmatprep.mubr.bf16.mxu0 %v2909_v36  ;;  %794 = vmatprep.mubr.bf16.mxu1 %v2909_v36 }
 0x178   : > { %2516 = vmatmul.mubr.msk.bf16.gmra.mrb[20].mxu0 %vm265_vm0, %v336_v14  ;;  %2518 = vmatmul.mubr.msk.bf16.gmra.mrb[20].mxu1 %vm265_vm0, %v336_v14 }
 0x223   : > { %v521_v21 = vpop.f32.mrb[0].mxu0  ;;  %v3087_v22 = vpop.f32.mrb[0].mxu1 }
 0x224   : > { %v523_v23 = vpop.f32.mrb[1].mxu0  ;;  %v576_v24 = vpop.f32.mrb[1].mxu1  ;;  %v2630_v58 = vpack.c.bf16 %v521_v21, %v521_v21  ;;  %v2632_v14 = vpack.c.bf16 %v3087_v22, %v3087_v22 }
 0x225   : > { %v2631_v25 = vpack.c.bf16 %v523_v23, %v523_v23  ;;  %v525_v26 = vpop.f32.mrb[2].mxu0  ;;  %v3089_v27 = vpop.f32.mrb[2].mxu1  ;;  %v2633_v61 = vpack.c.bf16 %v576_v24, %v576_v24 }
 0x226   : > { %v527_v28 = vpop.f32.mrb[3].mxu0  ;;  %v580_v29 = vpop.f32.mrb[3].mxu1  ;;  %v2638_v1 = vpack.c.bf16 %v525_v26, %v525_v26  ;;  %v2640_v17 = vpack.c.bf16 %v3089_v27, %v3089_v27 }
 0x227   : > { %v2639_v30 = vpack.c.bf16 %v527_v28, %v527_v28  ;;  %949 = vmatprep.mubr.bf16.mxu0 %v2631_v25  ;;  %v2641_v3 = vpack.c.bf16 %v580_v29, %v580_v29 }
 0x229   : > { %1045 = vmatprep.mubr.bf16.mxu1 %v2639_v30 }
 0x22b   : > { %v3091_v31 = vpop.f32.mrb[4].mxu0  ;;  %v3093_v32 = vpop.f32.mrb[4].mxu1 }
 0x22c   : > { %v3095_v33 = vpop.f32.mrb[5].mxu0  ;;  %v3097_v34 = vpop.f32.mrb[5].mxu1  ;;  %v2646_v30 = vpack.c.bf16 %v3091_v31, %v3091_v31 }
 0x22d   : > { %v3099_v35 = vpop.f32.mrb[6].mxu0  ;;  %v3101_v37 = vpop.f32.mrb[6].mxu1  ;;  %v2647_v15 = vpack.c.bf16 %v3095_v33, %v3095_v33  ;;  %v2649_v33 = vpack.c.bf16 %v3097_v34, %v3097_v34 }
 0x22e   : > { %v3103_v38 = vpop.f32.mrb[7].mxu0  ;;  %v3105_v39 = vpop.f32.mrb[7].mxu1 }
 0x22f   : > { %v2655_v21 = vpack.c.bf16 %v3103_v38, %v3103_v38 }
 0x233   : > { %v627_v40 = vpop.f32.mrb[8].mxu0  ;;  %v680_v41 = vpop.f32.mrb[8].mxu1 }
 0x234   : > { %v629_v42 = vpop.f32.mrb[9].mxu0  ;;  %v682_v43 = vpop.f32.mrb[9].mxu1  ;;  %v2634_v47 = vpack.c.bf16 %v627_v40, %v627_v40  ;;  %v2636_v62 = vpack.c.bf16 %v680_v41, %v680_v41  ;;  %v2654_v40 = vpack.c.bf16 %v3099_v35, %v3099_v35  ;;  %v2648_v35 = vpack.c.bf16 %v3093_v32, %v3093_v32 }
 0x235   : > { %v2635_v44 = vpack.c.bf16 %v629_v42, %v629_v42  ;;  %v631_v45 = vpop.f32.mrb[10].mxu0  ;;  %v684_v46 = vpop.f32.mrb[10].mxu1  ;;  %v2637_v50 = vpack.c.bf16 %v682_v43, %v682_v43  ;;  %v2657_v42 = vpack.c.bf16 %v3105_v39, %v3105_v39  ;;  %v2656_v39 = vpack.c.bf16 %v3101_v37, %v3101_v37 }
 0x236   : > { %v633_v48 = vpop.f32.mrb[11].mxu0  ;;  %v686_v49 = vpop.f32.mrb[11].mxu1  ;;  %v2642_v52 = vpack.c.bf16 %v631_v45, %v631_v45  ;;  %v2644_v4 = vpack.c.bf16 %v684_v46, %v684_v46 }
 0x237   : > { %v2643_v51 = vpack.c.bf16 %v633_v48, %v633_v48  ;;  %917 = vmatprep.subr.bf16.mxu0 %v2635_v44  ;;  %v2645_v53 = vpack.c.bf16 %v686_v49, %v686_v49 }
 0x238   : > { %918 = vmatpush1.bf16.xpose.msra.mxu0 %v2634_v47 }
 0x239   : > { %957 = vmatprep.subr.bf16.mxu0 %v2637_v50  ;;  %1013 = vmatprep.subr.bf16.mxu1 %v2643_v51 }
 0x23a   : > { %1014 = vmatpush1.bf16.xpose.msra.mxu1 %v2642_v52 }
 0x23b   : > { %v637_v54 = vpop.f32.mrb[12].mxu0  ;;  %v3107_v55 = vpop.f32.mrb[12].mxu1  ;;  %1053 = vmatprep.subr.bf16.mxu1 %v2645_v53 }
 0x23c   : > { %v639_v56 = vpop.f32.mrb[13].mxu0  ;;  %v692_v57 = vpop.f32.mrb[13].mxu1  ;;  %v2650_v16 = vpack.c.bf16 %v637_v54, %v637_v54  ;;  %v2652_v38 = vpack.c.bf16 %v3107_v55, %v3107_v55 }
 0x23d   : > { %v641_v59 = vpop.f32.mrb[14].mxu0  ;;  %v3109_v60 = vpop.f32.mrb[14].mxu1  ;;  %v2651_v2 = vpack.c.bf16 %v639_v56, %v639_v56  ;;  %v2653_v18 = vpack.c.bf16 %v692_v57, %v692_v57 }
 0x23e   : > { %v643_v63 = vpop.f32.mrb[15].mxu0  ;;  %v696_v0 = vpop.f32.mrb[15].mxu1  ;;  %v2658_v23 = vpack.c.bf16 %v641_v59, %v641_v59  ;;  %v2660_v43 = vpack.c.bf16 %v3109_v60, %v3109_v60 }
 0x23f   : > { %950 = vmatmul.mubr.bf16.vlgmr.msra.gmra.mrb[24].mxu0 %v2630_v58  ;;  %v2659_v5 = vpack.c.bf16 %v643_v63, %v643_v63  ;;  %v2661_v25 = vpack.c.bf16 %v696_v0, %v696_v0 }
 0x240   : > { %958 = vmatpush1.bf16.xpose.msra.mxu0 %v2636_v62  ;;  %989 = vmatprep.mubr.bf16.mxu0 %v2633_v61 }
 0x241   : > { %1046 = vmatmul.mubr.bf16.vlgmr.msra.gmra.mrb[24].mxu1 %v2638_v1  ;;  %1109 = vmatprep.subr.bf16.mxu0 %v2651_v2 }
 0x242   : > { %1054 = vmatpush1.bf16.xpose.msra.mxu1 %v2644_v4  ;;  %1085 = vmatprep.mubr.bf16.mxu1 %v2641_v3 }
 0x243   : > { %v733_v6 = vpop.f32.mrb[16].mxu0  ;;  %v786_v7 = vpop.f32.mrb[16].mxu1  ;;  %1205 = vmatprep.subr.bf16.mxu1 %v2659_v5 }
 0x244   : > { %v735_v8 = vpop.f32.mrb[17].mxu0  ;;  %v788_v9 = vpop.f32.mrb[17].mxu1  ;;  %v2662_v34 = vpack.c.bf16 %v733_v6, %v733_v6  ;;  %v2664_v44 = vpack.c.bf16 %v786_v7, %v786_v7 }
 0x245   : > { %v3111_v10 = vpop.f32.mrb[18].mxu0  ;;  %v3113_v11 = vpop.f32.mrb[18].mxu1  ;;  %v2663_v41 = vpack.c.bf16 %v735_v8, %v735_v8  ;;  %v2665_v31 = vpack.c.bf16 %v788_v9, %v788_v9 }
 0x246   : > { %v739_v12 = vpop.f32.mrb[19].mxu0  ;;  %v792_v13 = vpop.f32.mrb[19].mxu1  ;;  %v1387_v45 = vsel %vm1385_vm1, %v2662_v34, 0  ;;  %v1393_v47 = vsel %vm1385_vm1, %v2664_v44, 0 }
 0x247   : > { %v2667_v46 = vpack.c.bf16 %v739_v12, %v739_v12  ;;  %v2669_v48 = vpack.c.bf16 %v792_v13, %v792_v13 }
 0x24b   : > { %v3121_v19 = vpop.f32.mrb[20].mxu0  ;;  %v3123_v20 = vpop.f32.mrb[20].mxu1  ;;  %990 = vmatmul.mubr.bf16.vlgmr.msra.gmra.mrb[24].mxu0 %v2632_v14 }
 0x24c   : > { %1110 = vmatpush1.bf16.xpose.msra.mxu0 %v2650_v16  ;;  %v3127_v24 = vpop.f32.mrb[21].mxu0  ;;  %v3129_v22 = vpop.f32.mrb[21].mxu1  ;;  %1141 = vmatprep.mubr.bf16.mxu0 %v2647_v15 }
 0x24d   : > { %1149 = vmatprep.subr.bf16.mxu0 %v2653_v18  ;;  %v3131_v26 = vpop.f32.mrb[22].mxu0  ;;  %v3133_v27 = vpop.f32.mrb[22].mxu1  ;;  %1086 = vmatmul.mubr.bf16.vlgmr.msra.gmra.mrb[24].mxu1 %v2640_v17 }
 0x24e   : > { %1206 = vmatpush1.bf16.xpose.msra.mxu1 %v2658_v23  ;;  %v3135_v28 = vpop.f32.mrb[23].mxu0  ;;  %v3137_v29 = vpop.f32.mrb[23].mxu1  ;;  %1237 = vmatprep.mubr.bf16.mxu1 %v2655_v21 }
 0x24f   : > { %1245 = vmatprep.subr.bf16.mxu1 %v2661_v25 }
 0x253   : > { %1142 = vmatmul.mubr.bf16.vlgmr.msra.gmra.mrb[28].mxu0 %v2646_v30 }
 0x254   : > { %1150 = vmatpush1.bf16.xpose.msra.mxu0 %v2652_v38  ;;  %1181 = vmatprep.mubr.bf16.mxu0 %v2649_v33 }
 0x255   : > { %2555 = vmatprep.subr.msk.bf16.mxu0 %vm1385_vm1, %v2663_v41  ;;  %1238 = vmatmul.mubr.bf16.vlgmr.msra.gmra.mrb[28].mxu1 %v2654_v40 }
 0x256   : > { %1246 = vmatpush1.bf16.xpose.msra.mxu1 %v2660_v43  ;;  %1277 = vmatprep.mubr.bf16.mxu1 %v2657_v42 }
 0x257   : > { %2557 = vmatprep.subr.msk.bf16.mxu1 %vm1385_vm1, %v2665_v31 }
 0x25f   : > { %1182 = vmatmul.mubr.bf16.vlgmr.msra.gmra.mrb[28].mxu0 %v2648_v35 }
 0x260   : > { %1399 = vmatpush1.bf16.msra.mxu0 %v1387_v45  ;;  %1430 = vmatprep.mubr.bf16.mxu0 %v2909_v36  ;;  %v2666_v45 = vpack.c.bf16 %v3111_v10, %v3111_v10  ;;  %v2671_v10 = vpack.c.bf16 %v3127_v24, %v3127_v24  ;;  %v2670_v24 = vpack.c.bf16 %v3121_v19, %v3121_v19 }
 0x261   : > { %2563 = vmatprep.subr.msk.bf16.mxu0 %vm1385_vm1, %v2667_v46  ;;  %1278 = vmatmul.mubr.bf16.vlgmr.msra.gmra.mrb[28].mxu1 %v2656_v39  ;;  %v2668_v46 = vpack.c.bf16 %v3113_v11, %v3113_v11  ;;  %v2677_v19 = vpack.c.bf16 %v3137_v29, %v3137_v29 }
 0x262   : > { %1440 = vmatpush1.bf16.msra.mxu1 %v1393_v47  ;;  %1471 = vmatprep.mubr.bf16.mxu1 %v2909_v36 }
 0x263   : > { %2565 = vmatprep.subr.msk.bf16.mxu1 %vm1385_vm1, %v2669_v48 }
 0x31e   : > { %v991_v32 = vpop.f32.mrb[24].mxu0 }
 0x31f   : > { %v1285_v37 = vmul.f32 0.125, %v991_v32  ;;  %v993_v49 = vpop.f32.mrb[25].mxu0 }
 0x320   : > { %v994_v50 = vpop.f32.mrb[26].mxu0  ;;  %v1087_v51 = vpop.f32.mrb[24].mxu1 }
 0x321   : > { %v1286_v52 = vmul.f32 0.125, %v1087_v51  ;;  %v995_v53 = vpop.f32.mrb[27].mxu0  ;;  %v1089_v54 = vpop.f32.mrb[25].mxu1  ;;  %v1290_v55 = vsel %vm1289_vm2, %v1285_v37, -inf }
 0x322   : > { %v1090_v56 = vpop.f32.mrb[26].mxu1  ;;  %1291 = vmax.xlane.f32.xlu0 %v1290_v55  ;;  %v1488_v53 = vsel %vm1385_vm1, %v2666_v45, 0  ;;  %v1494_v54 = vsel %vm1385_vm1, %v2668_v46, 0  ;;  %v2673_v55 = vpack.c.bf16 %v3129_v22, %v3129_v22  ;;  %v2672_v22 = vpack.c.bf16 %v3123_v20, %v3123_v20  ;;  %v2850_v45 = vld [vmem:[%s3401_s3 + $0xf0] sm:$0xff]  }
 0x323   : > { %v1091_v57 = vpop.f32.mrb[27].mxu1  ;;  %v1293_v58 = vsel %vm1289_vm2, %v1286_v52, -inf  ;;  %v2674_v20 = vpack.c.bf16 %v3131_v26, %v3131_v26  ;;  %v2851_v46 = vld [vmem:[%s3401_s3 + $0x30] sm:$0xff]  }
 0x324   : > { %1294 = vmax.xlane.f32.xlu1 %v1293_v58 }
 0x332   : > { %v1183_v59 = vpop.f32.mrb[28].mxu0 }
 0x333   : > { %v3165_v60 = vmul.f32 0.125, %v1183_v59  ;;  %v1185_v61 = vpop.f32.mrb[29].mxu0 }
 0x334   : > { %v1186_v62 = vpop.f32.mrb[30].mxu0  ;;  %v1279_v63 = vpop.f32.mrb[28].mxu1 }
 0x335   : > { %v3167_v0 = vmul.f32 0.125, %v1279_v63  ;;  %v1187_v1 = vpop.f32.mrb[31].mxu0  ;;  %v1281_v2 = vpop.f32.mrb[29].mxu1  ;;  %v1296_v3 = vsel %vm1289_vm2, %v3165_v60, -inf }
 0x336   : > { %v1282_v4 = vpop.f32.mrb[30].mxu1  ;;  %1297 = vmax.xlane.f32.xlu0 %v1296_v3  ;;  %v1595_v2 = vsel %vm1385_vm1, %v2672_v22, 0  ;;  %v2675_v3 = vpack.c.bf16 %v3135_v28, %v3135_v28  ;;  %v2676_v28 = vpack.c.bf16 %v3133_v27, %v3133_v27  ;;  %v2825_v27 = vld [vmem:[%s3401_s3 + $0x40] sm:$0xff]  }
 0x337   : > { %v1283_v5 = vpop.f32.mrb[31].mxu1  ;;  %v1299_v6 = vsel %vm1289_vm2, %v3167_v0, -inf }
 0x338   : > { %1300 = vmax.xlane.f32.xlu1 %v1299_v6  ;;  %v1690_v6 = vsel %vm1385_vm1, %v2674_v20, 0 }
 0x3af   : > { %v1292_v7 = vpop.xlane.xlu0 %1291 }
 0x3b0   : > { %v1302_v8 = vrot.slane %v1292_v7, 4 }
 0x3b1   : > { %v1295_v9 = vpop.xlane.xlu1 %1294 }
 0x3b2   : > { %v1303_v12 = vmax.f32 %v1292_v7, %v1302_v8  ;;  %v1308_v13 = vrot.slane %v1295_v9, 4  ;;  %v1696_v7 = vsel %vm1385_vm1, %v2676_v28, 0 }
 0x3b4   : > { %v1304_v14 = vrot.slane %v1303_v12, 2  ;;  %v1309_v15 = vmax.f32 %v1295_v9, %v1308_v13  ;;  %v2826_v9 = vld [vmem:[%s3401_s3 + $0xc0] sm:$0xff]   ;;  %v2829_v13 = vld [vmem:[%s3401_s3 + $0x48] sm:$0xff]  }
 0x3b6   : > { %v1305_v16 = vmax.f32 %v1303_v12, %v1304_v14  ;;  %v1310_v17 = vrot.slane %v1309_v15, 2  ;;  %v2827_v12 = vld [vmem:[%s3401_s3] sm:$0xff]   ;;  %v2830_v14 = vld [vmem:[%s3401_s3 + $0xc8] sm:$0xff]  }
 0x3b8   : > { %v1306_v18 = vrot.slane %v1305_v16, 1  ;;  %v1311_v21 = vmax.f32 %v1309_v15, %v1310_v17  ;;  %v2831_v15 = vld [vmem:[%s3401_s3 + $0x8] sm:$0xff]   ;;  %v2833_v17 = vld [vmem:[%s3401_s3 + $0x50] sm:$0xff]  }
 0x3ba   : > { %v1307_v23 = vmax.f32 %v1305_v16, %v1306_v18  ;;  %v1312_v25 = vrot.slane %v1311_v21, 1  ;;  %v2832_v16 = vld [vmem:[%s3401_s3 + $0x88] sm:$0xff]   ;;  %v2834_v18 = vld [vmem:[%s3401_s3 + $0xd0] sm:$0xff]  }
 0x3bc   : > { %v1326_v30 = vsub.f32 %v1285_v37, %v1307_v23  ;;  %v1313_v33 = vmax.f32 %v1311_v21, %v1312_v25  ;;  %v2835_v21 = vld [vmem:[%s3401_s3 + $0x10] sm:$0xff]   ;;  %v2837_v25 = vld [vmem:[%s3401_s3 + $0x58] sm:$0xff]  }
 0x3bd   : > { %v2836_v23 = vld [vmem:[%s3401_s3 + $0x90] sm:$0xff]  }
 0x3be   : > { %v1330_v38 = vmul.f32 1.442695, %v1326_v30  ;;  %v1327_v40 = vsub.f32 %v1286_v52, %v1313_v33  ;;  %v2838_v30 = vld [vmem:[%s3401_s3 + $0xd8] sm:$0xff]  }
 0x3bf   : > { %v2839_v33 = vld [vmem:[%s3401_s3 + $0x18] sm:$0xff]  }
 0x3c0   : > { %2871 = vpow2.f32 %v1330_v38  ;;  %v1332_v41 = vmul.f32 1.442695, %v1327_v40  ;;  %v2840_v38 = vld [vmem:[%s3401_s3 + $0x98] sm:$0xff]   ;;  %v2841_v40 = vld [vmem:[%s3401_s3 + $0x60] sm:$0xff]  }
 0x3c2   : > { %2873 = vpow2.f32 %v1332_v41  ;;  %v2842_v41 = vld [vmem:[%s3401_s3 + $0xe0] sm:$0xff]  }
 0x3c3   : > { %v1298_v42 = vpop.xlane.xlu0 %1297 }
 0x3c4   : > { %v1314_v43 = vrot.slane %v1298_v42, 4 }
 0x3c5   : > { %v1301_v31 = vpop.xlane.xlu1 %1300 }
 0x3c6   : > { %v1315_v34 = vmax.f32 %v1298_v42, %v1314_v43  ;;  %v1320_v35 = vrot.slane %v1301_v31, 4  ;;  %v2843_v42 = vld [vmem:[%s3401_s3 + $0x20] sm:$0xff]  }
 0x3c7   : > { %v2844_v43 = vld [vmem:[%s3401_s3 + $0xa0] sm:$0xff]  }
 0x3c8   : > { %v1316_v44 = vrot.slane %v1315_v34, 2  ;;  %v1321_v39 = vmax.f32 %v1301_v31, %v1320_v35  ;;  %v2845_v31 = vld [vmem:[%s3401_s3 + $0x68] sm:$0xff]  }
 0x3c9   : > { %v2847_v35 = vld [vmem:[%s3401_s3 + $0x28] sm:$0xff]  }
 0x3ca   : > { %v2872_v47 = vpop.eup %2871  ;;  %v1317_v48 = vmax.f32 %v1315_v34, %v1316_v44  ;;  %v1322_v32 = vrot.slane %v1321_v39, 2  ;;  %v2846_v34 = vld [vmem:[%s3401_s3 + $0xe8] sm:$0xff]  }
 0x3cb   : > { %v1338_v37 = vsel %vm1289_vm2, %v2872_v47, 0.0  ;;  %v1374_v49 = vpack.c.bf16 %v2872_v47, %v2872_v47  ;;  %v2848_v44 = vld [vmem:[%s3401_s3 + $0xa8] sm:$0xff]   ;;  %v2852_v47 = vld [vmem:[%s3401_s3 + $0xb0] sm:$0xff]  }
 0x3cc   : > { %v2874_v50 = vpop.eup %2873  ;;  %v1318_v51 = vrot.slane %v1317_v48, 1  ;;  %v1323_v52 = vmax.f32 %v1321_v39, %v1322_v32  ;;  %1339 = vadd.xlane.f32.xlu0 %v1338_v37  ;;  %v2849_v39 = vld [vmem:[%s3401_s3 + $0x70] sm:$0xff]   ;;  %v2854_v32 = vld [vmem:[%s3401_s3 + $0xf8] sm:$0xff]  }
 0x3cd   : > { %2556 = vmatmul.mubr.msk.bf16.vlgmr.msra.gmra.mrb[32].mxu0 %vm1289_vm2, %v1374_v49  ;;  %2558 = vmatmul.mubr.msk.bf16.vlgmr.msra.gmra.mrb[32].mxu1 %vm1289_vm2, %v1374_v49  ;;  %v1341_v11 = vsel %vm1289_vm2, %v2874_v50, 0.0  ;;  %v1375_v63 = vpack.c.bf16 %v2874_v50, %v2874_v50  ;;  %v2855_v37 = vld [vmem:[%s3401_s3 + $0x38] sm:$0xff]  }
 0x3ce   : > { %v1319_v56 = vmax.f32 %v1317_v48, %v1318_v51  ;;  %v1324_v57 = vrot.slane %v1323_v52, 1  ;;  %1500 = vmatpush1.bf16.msra.mxu0 %v1488_v53  ;;  %1541 = vmatpush1.bf16.msra.mxu1 %v1494_v54  ;;  %v2853_v48 = vld [vmem:[%s3401_s3 + $0x78] sm:$0xff]  }
 0x3cf   : > { %1342 = vadd.xlane.f32.xlu1 %v1341_v11  ;;  %2571 = vmatprep.subr.msk.bf16.mxu0 %vm1385_vm1, %v2671_v10  ;;  %v2856_v49 = vld [vmem:[%s3401_s3 + $0xb8] sm:$0xff]  }
 0x3d0   : > { %v1328_v58 = vsub.f32 %v3165_v60, %v1319_v56  ;;  %v1325_v59 = vmax.f32 %v1323_v52, %v1324_v57  ;;  %2573 = vmatprep.subr.msk.bf16.mxu1 %vm1385_vm1, %v2673_v55  ;;  %1531 = vmatprep.mubr.bf16.mxu0 %v2909_v36  ;;  %v1589_v60 = vsel %vm1385_vm1, %v2670_v24, 0 }
 0x3d1   : > { %1572 = vmatprep.mubr.bf16.mxu1 %v2909_v36 }
 0x3d2   : > { %v1334_v61 = vmul.f32 1.442695, %v1328_v58  ;;  %v1329_v62 = vsub.f32 %v3167_v0, %v1325_v59 }
 0x3d4   : > { %2875 = vpow2.f32 %v1334_v61  ;;  %v1336_v1 = vmul.f32 1.442695, %v1329_v62 }
 0x3d5   : > { %2564 = vmatmul.mubr.msk.bf16.vlgmr.msra.gmra.mrb[36].mxu0 %vm1289_vm2, %v1375_v63  ;;  %2566 = vmatmul.mubr.msk.bf16.vlgmr.msra.gmra.mrb[36].mxu1 %vm1289_vm2, %v1375_v63 }
 0x3d6   : > { %2877 = vpow2.f32 %v1336_v1  ;;  %1601 = vmatpush1.bf16.msra.mxu0 %v1589_v60  ;;  %1642 = vmatpush1.bf16.msra.mxu1 %v1595_v2 }
 0x3d7   : > { %2579 = vmatprep.subr.msk.bf16.mxu0 %vm1385_vm1, %v2675_v3  ;;  %2581 = vmatprep.subr.msk.bf16.mxu1 %vm1385_vm1, %v2677_v19 }
 0x3d8   : > { %1632 = vmatprep.mubr.bf16.mxu0 %v2909_v36  ;;  %1673 = vmatprep.mubr.bf16.mxu1 %v2909_v36 }
 0x3de   : > { %v2876_v29 = vpop.eup %2875 }
 0x3df   : > { %v1344_v0 = vsel %vm1289_vm2, %v2876_v29, 0.0  ;;  %v1376_v4 = vpack.c.bf16 %v2876_v29, %v2876_v29 }
 0x3e0   : > { %v2878_v5 = vpop.eup %2877  ;;  %1345 = vadd.xlane.f32.xlu0 %v1344_v0 }
 0x3e1   : > { %2572 = vmatmul.mubr.msk.bf16.vlgmr.msra.gmra.mrb[40].mxu0 %vm1289_vm2, %v1376_v4  ;;  %2574 = vmatmul.mubr.msk.bf16.vlgmr.msra.gmra.mrb[40].mxu1 %vm1289_vm2, %v1376_v4  ;;  %v1347_v8 = vsel %vm1289_vm2, %v2878_v5, 0.0  ;;  %v1377_v26 = vpack.c.bf16 %v2878_v5, %v2878_v5 }
 0x3e2   : > { %1702 = vmatpush1.bf16.msra.mxu0 %v1690_v6  ;;  %1743 = vmatpush1.bf16.msra.mxu1 %v1696_v7 }
 0x3e3   : > { %1348 = vadd.xlane.f32.xlu1 %v1347_v8  ;;  %1733 = vmatprep.mubr.bf16.mxu0 %v2909_v36 }
 0x3e4   : > { %1774 = vmatprep.mubr.bf16.mxu1 %v2909_v36  ;;  %v2828_v36 = vld [vmem:[%s3401_s3 + $0x80] sm:$0xff]   ;;  %2678 = vmatprep.subr.bf16.mxu0 %v2825_v27 }
 0x3e5   : > { %2706 = vmatprep.subr.bf16.mxu1 %v2826_v9 }
 0x3e9   : > { %2580 = vmatmul.mubr.msk.bf16.vlgmr.msra.gmra.mrb[44].mxu0 %vm1289_vm2, %v1377_v26  ;;  %2582 = vmatmul.mubr.msk.bf16.vlgmr.msra.gmra.mrb[44].mxu1 %vm1289_vm2, %v1377_v26 }
 0x3ea   : > { %2679 = vmatpush3.bf16.msra.mxu0 %v2827_v12  ;;  %2707 = vmatpush3.bf16.msra.mxu1 %v2828_v36 }
 0x3eb   : > { %2680 = vmatprep.subr.bf16.mxu0 %v2829_v13  ;;  %2708 = vmatprep.subr.bf16.mxu1 %v2830_v14 }
 0x3ee   : > { %2681 = vmatpush3.bf16.msra.mxu0 %v2831_v15  ;;  %2709 = vmatpush3.bf16.msra.mxu1 %v2832_v16 }
 0x3ef   : > { %2682 = vmatprep.subr.bf16.mxu0 %v2833_v17  ;;  %2710 = vmatprep.subr.bf16.mxu1 %v2834_v18 }
 0x3f2   : > { %2683 = vmatpush3.bf16.msra.mxu0 %v2835_v21  ;;  %2711 = vmatpush3.bf16.msra.mxu1 %v2836_v23 }
 0x3f3   : > { %2684 = vmatprep.subr.bf16.mxu0 %v2837_v25  ;;  %2712 = vmatprep.subr.bf16.mxu1 %v2838_v30 }
 0x3f6   : > { %2685 = vmatpush3.bf16.msra.mxu0 %v2839_v33  ;;  %2713 = vmatpush3.bf16.msra.mxu1 %v2840_v38 }
 0x3f7   : > { %2686 = vmatprep.subr.bf16.mxu0 %v2841_v40  ;;  %2714 = vmatprep.subr.bf16.mxu1 %v2842_v41 }
 0x3fa   : > { %2687 = vmatpush3.bf16.msra.mxu0 %v2843_v42  ;;  %2715 = vmatpush3.bf16.msra.mxu1 %v2844_v43 }
 0x3fb   : > { %2688 = vmatprep.subr.bf16.mxu0 %v2845_v31  ;;  %2716 = vmatprep.subr.bf16.mxu1 %v2846_v34 }
 0x3fe   : > { %2689 = vmatpush3.bf16.msra.mxu0 %v2847_v35  ;;  %2717 = vmatpush3.bf16.msra.mxu1 %v2848_v44 }
 0x3ff   : > { %2690 = vmatprep.subr.bf16.mxu0 %v2849_v39  ;;  %2718 = vmatprep.subr.bf16.mxu1 %v2850_v45 }
 0x402   : > { %2691 = vmatpush3.bf16.msra.mxu0 %v2851_v46  ;;  %2719 = vmatpush3.bf16.msra.mxu1 %v2852_v47 }
 0x403   : > { %2692 = vmatprep.subr.bf16.mxu0 %v2853_v48  ;;  %2720 = vmatprep.subr.bf16.mxu1 %v2854_v32 }
 0x406   : > { %2693 = vmatpush3.bf16.msra.mxu0 %v2855_v37  ;;  %2721 = vmatpush3.bf16.msra.mxu1 %v2856_v49 }
 0x459   : > { %v1340_v50 = vpop.xlane.xlu0 %1339 }
 0x45a   : > { %v1350_v52 = vrot.slane %v1340_v50, 4 }
 0x45c   : > { %v1343_v51 = vpop.xlane.xlu1 %1342  ;;  %v1351_v54 = vadd.f32 %v1350_v52, %v1340_v50 }
 0x45d   : > { %v1356_v53 = vrot.slane %v1343_v51, 4 }
 0x45e   : > { %v1352_v11 = vrot.slane %v1351_v54, 2 }
 0x45f   : > { %v1357_v10 = vadd.f32 %v1356_v53, %v1343_v51 }
 0x460   : > { %v1353_v56 = vadd.f32 %v1352_v11, %v1351_v54 }
 0x461   : > { %v1358_v55 = vrot.slane %v1357_v10, 2 }
 0x462   : > { %v1354_v58 = vrot.slane %v1353_v56, 1 }
 0x463   : > { %v1359_v57 = vadd.f32 %v1358_v55, %v1357_v10 }
 0x464   : > { %v1355_v63 = vadd.f32 %v1354_v58, %v1353_v56 }
 0x465   : > { %v1360_v22 = vrot.slane %v1359_v57, 1 }
 0x466   : > { %2879 = vrcp.f32 %v1355_v63 }
 0x467   : > { %v1361_v1 = vadd.f32 %v1360_v22, %v1359_v57 }
 0x469   : > { %2881 = vrcp.f32 %v1361_v1 }
 0x46d   : > { %v1346_v59 = vpop.xlane.xlu0 %1345 }
 0x46e   : > { %v1362_v61 = vrot.slane %v1346_v59, 4 }
 0x470   : > { %v1349_v24 = vpop.xlane.xlu1 %1348  ;;  %v1363_v60 = vadd.f32 %v1362_v61, %v1346_v59  ;;  %v2880_v27 = vpop.eup %2879 }
 0x471   : > { %v1368_v62 = vrot.slane %v1349_v24, 4 }
 0x472   : > { %v1364_v3 = vrot.slane %v1363_v60, 2 }
 0x473   : > { %v1369_v2 = vadd.f32 %v1368_v62, %v1349_v24  ;;  %v2882_v9 = vpop.eup %2881 }
 0x474   : > { %v1365_v8 = vadd.f32 %v1364_v3, %v1363_v60 }
 0x475   : > { %v1370_v19 = vrot.slane %v1369_v2, 2 }
 0x476   : > { %v1366_v12 = vrot.slane %v1365_v8, 1 }
 0x477   : > { %v1371_v26 = vadd.f32 %v1370_v19, %v1369_v2 }
 0x478   : > { %v1367_v39 = vadd.f32 %v1366_v12, %v1365_v8 }
 0x479   : > { %v1372_v36 = vrot.slane %v1371_v26, 1 }
 0x47a   : > { %2883 = vrcp.f32 %v1367_v39 }
 0x47b   : > { %v1373_v45 = vadd.f32 %v1372_v36, %v1371_v26 }
 0x47d   : > { %2885 = vrcp.f32 %v1373_v45 }
 0x484   : > { %v2884_v52 = vpop.eup %2883 }
 0x487   : > { %v2886_v53 = vpop.eup %2885 }
 0x4a0   : > { %v1432_v20 = vpop.f32.mrb[32].mxu0  ;;  %v1473_v28 = vpop.f32.mrb[32].mxu1 }
 0x4a1   : > { %v1434_v29 = vpop.f32.mrb[33].mxu0  ;;  %v1475_v0 = vpop.f32.mrb[33].mxu1  ;;  %v1787_v15 = vmul.f32 %v2880_v27, %v1432_v20  ;;  %v1789_v16 = vmul.f32 %v2880_v27, %v1473_v28 }
 0x4a2   : > { %v1436_v4 = vpop.f32.mrb[34].mxu0  ;;  %v1477_v5 = vpop.f32.mrb[34].mxu1  ;;  %v1788_v25 = vmul.f32 %v2880_v27, %v1434_v29  ;;  %v1790_v30 = vmul.f32 %v2880_v27, %v1475_v0 }
 0x4a3   : > { %v1437_v6 = vpop.f32.mrb[35].mxu0  ;;  %v1478_v7 = vpop.f32.mrb[35].mxu1  ;;  %v2583_v4 = vld [vmem:[%s3399_s1 + $0x2] ss:$0 sm:$0xff] }
 0x4a8   : > { %v1533_v13 = vpop.f32.mrb[36].mxu0  ;;  %v1574_v14 = vpop.f32.mrb[36].mxu1 }
 0x4a9   : > { %v1791_v17 = vmul.f32 %v2882_v9, %v1533_v13  ;;  %v1793_v18 = vmul.f32 %v2882_v9, %v1574_v14  ;;  %v1535_v21 = vpop.f32.mrb[37].mxu0  ;;  %v1576_v23 = vpop.f32.mrb[37].mxu1 }
 0x4aa   : > { %v1792_v33 = vmul.f32 %v2882_v9, %v1535_v21  ;;  %v1794_v38 = vmul.f32 %v2882_v9, %v1576_v23  ;;  %v1537_v40 = vpop.f32.mrb[38].mxu0  ;;  %v1578_v41 = vpop.f32.mrb[38].mxu1  ;;  %v2896_v23 = vld [vmem:[%s2961_s27 + $0x8] sm:$0xff] }
 0x4ab   : > { %v1803_v42 = vpack.c.bf16 %v1791_v17, %v1787_v15  ;;  %v1805_v43 = vpack.c.bf16 %v1793_v18, %v1789_v16  ;;  %v1538_v31 = vpop.f32.mrb[39].mxu0  ;;  %v1579_v34 = vpop.f32.mrb[39].mxu1  ;;  %v2895_v17 = vld [vmem:[%s2961_s27] sm:$0xff] }
 0x4ac   : > { %v1804_v35 = vpack.c.bf16 %v1792_v33, %v1788_v25  ;;  %v1806_v44 = vpack.c.bf16 %v1794_v38, %v1790_v30 }
 0x4ae   : > { %2103 = vmatprep.mubr.bf16.mxu0 %v1804_v35  ;;  %2152 = vmatprep.mubr.bf16.mxu1 %v1806_v44 }
 0x4af   : > { %2104 = vmatmul.mubr.bf16.vlgmr.msra.gmra.mrb[48].mxu0 %v1803_v42  ;;  %2153 = vmatmul.mubr.bf16.vlgmr.msra.gmra.mrb[48].mxu1 %v1805_v43 }
 0x4b4   : > { %v1634_v46 = vpop.f32.mrb[40].mxu0  ;;  %v1675_v47 = vpop.f32.mrb[40].mxu1 }
 0x4b5   : > { %v1636_v48 = vpop.f32.mrb[41].mxu0  ;;  %v1677_v32 = vpop.f32.mrb[41].mxu1  ;;  %v1795_v11 = vmul.f32 %v2884_v52, %v1634_v46  ;;  %v1797_v55 = vmul.f32 %v2884_v52, %v1675_v47 }
 0x4b6   : > { %v1638_v37 = vpop.f32.mrb[42].mxu0  ;;  %v1679_v49 = vpop.f32.mrb[42].mxu1  ;;  %v1796_v24 = vmul.f32 %v2884_v52, %v1636_v48  ;;  %v1798_v22 = vmul.f32 %v2884_v52, %v1677_v32 }
 0x4b7   : > { %v1639_v50 = vpop.f32.mrb[43].mxu0  ;;  %v1680_v51 = vpop.f32.mrb[43].mxu1  ;;  %v2897_v37 = vld [vmem:[%s2961_s27 + $0x10] sm:$0xff] }
 0x4b8   : > { %v2898_v51 = vld [vmem:[%s2961_s27 + $0x18] sm:$0xff] }
 0x4bc   : > { %v1735_v54 = vpop.f32.mrb[44].mxu0  ;;  %v1776_v10 = vpop.f32.mrb[44].mxu1 }
 0x4bd   : > { %v1799_v56 = vmul.f32 %v2886_v53, %v1735_v54  ;;  %v1801_v57 = vmul.f32 %v2886_v53, %v1776_v10  ;;  %v1737_v58 = vpop.f32.mrb[45].mxu0  ;;  %v1778_v59 = vpop.f32.mrb[45].mxu1 }
 0x4be   : > { %v1800_v61 = vmul.f32 %v2886_v53, %v1737_v58  ;;  %v1802_v62 = vmul.f32 %v2886_v53, %v1778_v59  ;;  %v1739_v63 = vpop.f32.mrb[46].mxu0  ;;  %v1780_v1 = vpop.f32.mrb[46].mxu1 }
 0x4bf   : > { %v1807_v60 = vpack.c.bf16 %v1799_v56, %v1795_v11  ;;  %v1809_v2 = vpack.c.bf16 %v1801_v57, %v1797_v55  ;;  %v1740_v3 = vpop.f32.mrb[47].mxu0  ;;  %v1781_v19 = vpop.f32.mrb[47].mxu1 }
 0x4c0   : > { %v1808_v20 = vpack.c.bf16 %v1800_v61, %v1796_v24  ;;  %v1810_v28 = vpack.c.bf16 %v1802_v62, %v1798_v22 }
 0x4c2   : > { %2111 = vmatprep.mubr.bf16.mxu0 %v1808_v20  ;;  %2160 = vmatprep.mubr.bf16.mxu1 %v1810_v28 }
 0x4c3   : > { %2112 = vmatmul.mubr.bf16.gmra.mrb[52].mxu0 %v1807_v60  ;;  %2161 = vmatmul.mubr.bf16.gmra.mrb[52].mxu1 %v1809_v2 }
 0x582   : > { %v2694_v29 = vpop.f32.mrb[48].mxu0  ;;  %v2722_v0 = vpop.f32.mrb[48].mxu1 }
 0x583   : > { %v2695_v5 = vpop.f32.mrb[49].mxu0  ;;  %v2723_v6 = vpop.f32.mrb[49].mxu1 }
 0x584   : > { %v2696_v7 = vadd.f32 %v2695_v5, %v2694_v29  ;;  %v2724_v8 = vadd.f32 %v2723_v6, %v2722_v0  ;;  %v2697_v26 = vpop.f32.mrb[50].mxu0  ;;  %v2725_v27 = vpop.f32.mrb[50].mxu1  ;;  %v2857_v0 = vld [vmem:[%s3402_s4] sm:$0xff]   ;;  %v2860_v6 = vld [vmem:[%s3403_s5 + $0x8] sm:$0xff]  }
 0x585   : > { %v2698_v9 = vpop.f32.mrb[51].mxu0  ;;  %v2726_v12 = vpop.f32.mrb[51].mxu1  ;;  %2744 = vmatprep.subr.bf16.mxu0 %v2857_v0  ;;  %v2859_v5 = vld [vmem:[%s3403_s5] sm:$0xff]  }
 0x586   : > { %v2106_v36 = vadd.f32 %v2696_v7, %v2583_v4  ;;  %v2699_v13 = vadd.f32 %v2698_v9, %v2697_v26  ;;  %v2727_v14 = vadd.f32 %v2726_v12, %v2725_v27  ;;  %2745 = vmatpush3.bf16.msra.mxu0 %v2857_v0  ;;  %2752 = vmatprep.subr.bf16.mxu1 %v2859_v5 }
 0x587   : > { %2753 = vmatpush3.bf16.msra.mxu1 %v2859_v5 }
 0x588   : > { %v2155_v15 = vadd.f32 %v2724_v8, %v2106_v36  ;;  %v2109_v16 = vadd.f32 %v2699_v13, %v2583_v4  ;;  %2754 = vmatprep.subr.bf16.mxu1 %v2860_v6 }
 0x58a   : > { %v3323_v18 = vadd.f32 %v2895_v17, %v2155_v15  ;;  %v2158_v21 = vadd.f32 %v2727_v14, %v2109_v16  ;;  %v2899_v16 = vld [vmem:[%s3399_s1] ss:$0 sm:$0xff] }
 0x58b   : > { %2755 = vmatpush3.bf16.msra.mxu1 %v2860_v6 }
 0x58c   : > { %v3326_v25 = vadd.f32 %v2896_v23, %v2158_v21  ;;  %v2173_v30 = vsel %vm265_vm0, %v3323_v18, 0.0 }
 0x58d   : > { %2174 = vadd.xlane.f32.xlu0 %v2173_v30 }
 0x58e   : > { %v2176_v33 = vsel %vm265_vm0, %v3326_v25, 0.0 }
 0x58f   : > { %2177 = vadd.xlane.f32.xlu1 %v2176_v33 }
 0x596   : > { %v2700_v38 = vpop.f32.mrb[52].mxu0  ;;  %v2728_v40 = vpop.f32.mrb[52].mxu1 }
 0x597   : > { %v2701_v41 = vpop.f32.mrb[53].mxu0  ;;  %v2729_v42 = vpop.f32.mrb[53].mxu1 }
 0x598   : > { %v2702_v43 = vadd.f32 %v2701_v41, %v2700_v38  ;;  %v2730_v31 = vadd.f32 %v2729_v42, %v2728_v40  ;;  %v2703_v34 = vpop.f32.mrb[54].mxu0  ;;  %v2731_v35 = vpop.f32.mrb[54].mxu1  ;;  %v2900_v38 = vld [vmem:[%s3399_s1 + $0x1] ss:$0 sm:$0xff] }
 0x599   : > { %v2704_v44 = vpop.f32.mrb[55].mxu0  ;;  %v2732_v39 = vpop.f32.mrb[55].mxu1 }
 0x59a   : > { %v2114_v45 = vadd.f32 %v2702_v43, %v2583_v4  ;;  %v2705_v46 = vadd.f32 %v2704_v44, %v2703_v34  ;;  %v2733_v47 = vadd.f32 %v2732_v39, %v2731_v35 }
 0x59c   : > { %v2163_v48 = vadd.f32 %v2730_v31, %v2114_v45  ;;  %v2117_v32 = vadd.f32 %v2705_v46, %v2583_v4  ;;  %v2858_v4 = vld [vmem:[%s3402_s4 + $0x8] sm:$0xff]  }
 0x59d   : > { %2746 = vmatprep.subr.bf16.mxu0 %v2858_v4 }
 0x59e   : > { %v3333_v49 = vadd.f32 %v2897_v37, %v2163_v48  ;;  %v2166_v50 = vadd.f32 %v2733_v47, %v2117_v32  ;;  %2747 = vmatpush3.bf16.msra.mxu0 %v2858_v4 }
 0x5a0   : > { %v3336_v52 = vadd.f32 %v2898_v51, %v2166_v50  ;;  %v2179_v53 = vsel %vm265_vm0, %v3333_v49, 0.0  ;;  %v2861_v50 = vld [vmem:[%s3403_s5 + $0x10] sm:$0xff]   ;;  %v2862_v51 = vld [vmem:[%s3403_s5 + $0x18] sm:$0xff]  }
 0x5a1   : > { %2180 = vadd.xlane.f32.xlu0 %v2179_v53  ;;  %2756 = vmatprep.subr.bf16.mxu1 %v2861_v50  ;;  %v2616_v53 = vld [vmem:[%s3399_s1 + $0x3] ss:$0 sm:$0xff] }
 0x5a2   : > { %v2182_v54 = vsel %vm265_vm0, %v3336_v52, 0.0  ;;  %2757 = vmatpush3.bf16.msra.mxu1 %v2861_v50 }
 0x5a3   : > { %2183 = vadd.xlane.f32.xlu1 %v2182_v54  ;;  %2758 = vmatprep.subr.bf16.mxu1 %v2862_v51 }
 0x5a6   : > { %2759 = vmatpush3.bf16.msra.mxu1 %v2862_v51 }
 0x61a   : > { %v2175_v10 = vpop.xlane.xlu0 %2174 }
 0x61b   : > { %v2185_v11 = vmul.f32 0.03125, %v2175_v10 }
 0x61c   : > { %v2178_v55 = vpop.xlane.xlu1 %2177 }
 0x61d   : > { %v2189_v56 = vsub.f32 %v3323_v18, %v2185_v11  ;;  %v2186_v57 = vmul.f32 0.03125, %v2178_v55 }
 0x61f   : > { %v2190_v58 = vsub.f32 %v3326_v25, %v2186_v57  ;;  %v2193_v59 = vmul.f32 %v2189_v56, %v2189_v56 }
 0x621   : > { %v2197_v24 = vsel %vm265_vm0, %v2193_v59, 0.0  ;;  %v2194_v22 = vmul.f32 %v2190_v58, %v2190_v58 }
 0x622   : > { %2198 = vadd.xlane.f32.xlu0 %v2197_v24 }
 0x623   : > { %v2200_v61 = vsel %vm265_vm0, %v2194_v22, 0.0 }
 0x624   : > { %2201 = vadd.xlane.f32.xlu1 %v2200_v61 }
 0x62e   : > { %v2181_v62 = vpop.xlane.xlu0 %2180 }
 0x62f   : > { %v2187_v63 = vmul.f32 0.03125, %v2181_v62 }
 0x630   : > { %v2184_v1 = vpop.xlane.xlu1 %2183 }
 0x631   : > { %v2191_v60 = vsub.f32 %v3333_v49, %v2187_v63  ;;  %v2188_v2 = vmul.f32 0.03125, %v2184_v1 }
 0x633   : > { %v2192_v3 = vsub.f32 %v3336_v52, %v2188_v2  ;;  %v2195_v19 = vmul.f32 %v2191_v60, %v2191_v60 }
 0x635   : > { %v2203_v20 = vsel %vm265_vm0, %v2195_v19, 0.0  ;;  %v2196_v28 = vmul.f32 %v2192_v3, %v2192_v3 }
 0x636   : > { %2204 = vadd.xlane.f32.xlu0 %v2203_v20 }
 0x637   : > { %v2206_v29 = vsel %vm265_vm0, %v2196_v28, 0.0 }
 0x638   : > { %2207 = vadd.xlane.f32.xlu1 %v2206_v29 }
 0x6af   : > { %v2199_v7 = vpop.xlane.xlu0 %2198 }
 0x6b0   : > { %v2209_v8 = vmul.f32 0.03125, %v2199_v7 }
 0x6b1   : > { %v2202_v26 = vpop.xlane.xlu1 %2201 }
 0x6b2   : > { %v2213_v27 = vadd.f32 1e-05, %v2209_v8  ;;  %v2210_v9 = vmul.f32 0.03125, %v2202_v26 }
 0x6b4   : > { %2887 = vrsqrt.f32 %v2213_v27  ;;  %v2214_v12 = vadd.f32 1e-05, %v2210_v9 }
 0x6b6   : > { %2889 = vrsqrt.f32 %v2214_v12 }
 0x6be   : > { %v2888_v36 = vpop.eup %2887 }
 0x6bf   : > { %v2221_v13 = vmul.f32 %v2888_v36, %v2189_v56 }
 0x6c0   : > { %v2890_v14 = vpop.eup %2889 }
 0x6c1   : > { %v2222_v15 = vmul.f32 %v2890_v14, %v2190_v58  ;;  %v2225_v17 = vmul.f32 %v2899_v16, %v2221_v13 }
 0x6c3   : > { %v2205_v21 = vpop.xlane.xlu0 %2204  ;;  %v2226_v23 = vmul.f32 %v2899_v16, %v2222_v15  ;;  %v2229_v40 = vadd.f32 %v2900_v38, %v2225_v17 }
 0x6c4   : > { %v2211_v30 = vmul.f32 0.03125, %v2205_v21 }
 0x6c5   : > { %v2208_v33 = vpop.xlane.xlu1 %2207  ;;  %v2230_v41 = vadd.f32 %v2900_v38, %v2226_v23 }
 0x6c6   : > { %v2215_v42 = vadd.f32 1e-05, %v2211_v30  ;;  %v2212_v43 = vmul.f32 0.03125, %v2208_v33 }
 0x6c7   : > { %v2233_v31 = vpack.c.bf16 %v2230_v41, %v2229_v40 }
 0x6c8   : > { %2891 = vrsqrt.f32 %v2215_v42  ;;  %v2216_v34 = vadd.f32 1e-05, %v2212_v43 }
 0x6c9   : > { %2748 = vmatprep.mubr.msk.bf16.mxu0 %vm265_vm0, %v2233_v31 }
 0x6ca   : > { %2893 = vrsqrt.f32 %v2216_v34 }
 0x6d2   : > { %v2892_v35 = vpop.eup %2891 }
 0x6d3   : > { %v2223_v44 = vmul.f32 %v2892_v35, %v2191_v60  ;;  %v2621_v60 = vld [vmem:[%s3399_s1 + $0x4] ss:$0 sm:$0xff] }
 0x6d4   : > { %v2894_v39 = vpop.eup %2893 }
 0x6d5   : > { %v2227_v45 = vmul.f32 %v2899_v16, %v2223_v44  ;;  %v2224_v46 = vmul.f32 %v2894_v39, %v2192_v3 }
 0x6d7   : > { %v2228_v47 = vmul.f32 %v2899_v16, %v2224_v46  ;;  %v2231_v48 = vadd.f32 %v2900_v38, %v2227_v45 }
 0x6d9   : > { %v2232_v32 = vadd.f32 %v2900_v38, %v2228_v47 }
 0x6db   : > { %v2234_v37 = vpack.c.bf16 %v2232_v32, %v2231_v48 }
 0x6dd   : > { %2749 = vmatmul.mubr.msk.bf16.vlgmr.msra.gmra.mrb[56].mxu0 %vm265_vm0, %v2234_v37 }
 0x7b0   : > { %v2750_v54 = vpop.f32.mrb[56].mxu0 }
 0x7b1   : > { %v2304_v10 = vadd.f32 %v2750_v54, %v2616_v53  ;;  %v2295_v11 = vpop.f32.mrb[57].mxu0 }
 0x7b2   : > { %v2296_v55 = vadd.f32 %v2616_v53, %v2295_v11  ;;  %v2751_v56 = vpop.f32.mrb[58].mxu0 }
 0x7b3   : > { %v2307_v57 = vadd.f32 %v2751_v56, %v2616_v53  ;;  %v2298_v58 = vpop.f32.mrb[59].mxu0  ;;  %v2312_v24 = vmax.f32 %v2304_v10, 0.0 }
 0x7b4   : > { %v2299_v59 = vadd.f32 %v2616_v53, %v2298_v58  ;;  %v2310_v61 = vmax.f32 %v2296_v55, 0.0 }
 0x7b5   : > { %v2313_v22 = vmax.f32 %v2307_v57, 0.0 }
 0x7b6   : > { %v2311_v62 = vmax.f32 %v2299_v59, 0.0 }
 0x7b7   : > { %v2315_v63 = vpack.c.bf16 %v2313_v22, %v2312_v24 }
 0x7b8   : > { %v2314_v1 = vpack.c.bf16 %v2311_v62, %v2310_v61 }
 0x7ba   : > { %2760 = vmatprep.mubr.msk.bf16.mxu1 %vm2352_vm3, %v2314_v1 }
 0x7bb   : > { %2761 = vmatmul.mubr.msk.bf16.vlgmr.msra.gmra.mrb[56].mxu1 %vm2352_vm3, %v2315_v63 }
 0x88e   : > { %v2762_v2 = vpop.f32.mrb[56].mxu1 }
 0x88f   : > { %v2402_v3 = vadd.f32 %v2762_v2, %v2621_v60  ;;  %v2393_v19 = vpop.f32.mrb[57].mxu1 }
 0x890   : > { %v2394_v20 = vadd.f32 %v2621_v60, %v2393_v19  ;;  %v2763_v28 = vpop.f32.mrb[58].mxu1 }
 0x891   : > { %v2410_v29 = vadd.f32 %v2402_v3, %v3333_v49  ;;  %v2405_v0 = vadd.f32 %v2763_v28, %v2621_v60  ;;  %v2396_v4 = vpop.f32.mrb[59].mxu1 }
 0x892   : > { %v2408_v5 = vadd.f32 %v2394_v20, %v3323_v18  ;;  %v2397_v6 = vadd.f32 %v2621_v60, %v2396_v4 }
 0x893   : > { %2414 = vst.msk [vmem:[%s253_s25 + $0x10] sm:$0xff] %vm265_vm0, %v2410_v29  ;;  %v2411_v7 = vadd.f32 %v2405_v0, %v3336_v52 }
 0x894   : > { %2412 = vst.msk [vmem:[%s253_s25] sm:$0xff] %vm265_vm0, %v2408_v5  ;;  %v2409_v8 = vadd.f32 %v2397_v6, %v3326_v25 }
 0x895   : > { %2415 = vst.msk [vmem:[%s253_s25 + $0x18] sm:$0xff] %vm265_vm0, %v2411_v7 }
 0x896   : > { %2413 = vst.msk [vmem:[%s253_s25 + $0x8] sm:$0xff] %vm265_vm0, %v2409_v8 }
 0x897 PF: > { %s16_s21 = sadd.s32 1, %s2907_s21  }
 0x898   : > { %p13_p4 = scmp.ge.s32.totalorder %s16_s21, 6  }
 0x89a   :  { %15 = sbr.rel (!%p13_p4) target bundleno = 1 (0x1), region = 74 }

</bundles_post_ra>
